<compile_context>
chip_gen: v5e
topology: v5e:2x2
jax: 0.10.0
libtpu: 0.0.40
codegen_flags: <defaults>
</compile_context>

<pallas_src>
import math
from functools import partial

import numpy as np
import jax
import jax.numpy as jnp
from jax.experimental import pallas as pl
from jax.experimental.pallas import tpu as pltpu


# ----------------------------------------------------------------------------
# Bilinear x2 (align_corners=True) interpolation matrices, built on host as
# constants so they fold into the jitted graph.
# ----------------------------------------------------------------------------
def interp_matrix(n_in, n_out):
    """Row-interpolation matrix (n_out, n_in) for bilinear, align_corners=True."""
    src = np.arange(n_out, dtype=np.float64) * (n_in - 1) / (n_out - 1)
    lo = np.clip(np.floor(src).astype(np.int64), 0, n_in - 2)
    frac = (src - lo).astype(np.float32)
    A = np.zeros((n_out, n_in), np.float32)
    idx = np.arange(n_out)
    A[idx, lo] += 1.0 - frac
    A[idx, lo + 1] += frac
    return A


def upsample_x2_matrix(H, W):
    """Kronecker matrix (4*H*W, H*W): out_flat = A @ x_flat on the spatial axis."""
    return jnp.asarray(np.kron(interp_matrix(H, 2 * H), interp_matrix(W, 2 * W)))


# ----------------------------------------------------------------------------
# Fused head kernel.  One grid step == one batch element (channels-last).
#   refs = (x_ref, a_ref, w0, b0, w1, b1, ..., o_ref)
#     x_ref : (HW, Cin)     channels-last flattened pixels
#     a_ref : (HoWo, HW)    Kronecker bilinear-x2 matrix
#     wi    : (Cin_i, Cout_i)   bi : (1, Cout_i)
#     o_ref : (HoWo, Cout)  lane-dense output (Cout is 128 or 512)
# ----------------------------------------------------------------------------
def fused_head_kernel(upsample_after, *refs):
    x_ref, a_ref = refs[0], refs[1]
    o_ref = refs[-1]
    wbs = refs[2:-1]
    n_conv = len(wbs) // 2

    h = x_ref[...]
    for i in range(n_conv):
        if i == upsample_after:
            # bilinear x2 upsample as one lane-dense MXU matmul
            h = jnp.dot(a_ref[...], h, preferred_element_type=jnp.float32)
        w_ref, b_ref = wbs[2 * i], wbs[2 * i + 1]
        h = jnp.dot(h, w_ref[...], preferred_element_type=jnp.float32) + b_ref[...]
        h = jnp.maximum(h, 0.0)  # ReLU follows every conv in the PyTorch module
    o_ref[...] = h.astype(o_ref.dtype)


@partial(jax.jit, static_argnames=("upsample_after",))
def transformer_head_forward(x_nchw, convs, *, upsample_after):
    """convs: list of (w, b) with w: (Cin, Cout), b: (1, Cout). Returns NCHW."""
    N, Cin, H, W = x_nchw.shape
    Ho, Wo = 2 * H, 2 * W
    HW, HoWo = H * W, Ho * Wo
    Cout = convs[-1][0].shape[1]

    A = upsample_x2_matrix(H, W)                                 # (HoWo, HW)

    # Single layout flip to channels-last, flattened spatial.
    x = jnp.transpose(x_nchw, (0, 2, 3, 1)).reshape(N, HW, Cin)  # (N, HW, Cin)

    flat_args = [x, A]
    in_specs = [
        pl.BlockSpec((None, HW, Cin), lambda n: (n, 0, 0)),      # per-batch slab
        pl.BlockSpec((HoWo, HW), lambda n: (0, 0)),              # full A
    ]
    for (w, b) in convs:
        flat_args += [w, b]
        in_specs += [
            pl.BlockSpec(w.shape, lambda n: (0, 0)),
            pl.BlockSpec(b.shape, lambda n: (0, 0)),
        ]

    out = pl.pallas_call(
        partial(fused_head_kernel, upsample_after),
        out_shape=jax.ShapeDtypeStruct((N, HoWo, Cout), jnp.float32),
        grid_spec=pltpu.PrefetchScalarGridSpec(
            num_scalar_prefetch=0,
            grid=(N,),                                           # N=2 -> both v7x TCs busy
            in_specs=in_specs,
            out_specs=pl.BlockSpec((None, HoWo, Cout), lambda n: (n, 0, 0)),
        ),
        compiler_params=pltpu.CompilerParams(
            dimension_semantics=("parallel",),
            vmem_limit_bytes=32 * 1024 * 1024,                   # safe on v5e/v6e/v7x
        ),
    )(*flat_args)

    # Single layout flip back to NCHW.
    return jnp.transpose(out.reshape(N, Ho, Wo, Cout), (0, 3, 1, 2))


# ----------------------------------------------------------------------------
# Parameter construction matching the PyTorch module structure.
# NOTE: weights are stored as (Cin, Cout); loading real nn.Conv2d weights
# (Cout, Cin, 1, 1) would require a transpose.
# ----------------------------------------------------------------------------
def _conv_params(key, cin, cout):
    kw, kb = jax.random.split(key)
    bound = 1.0 / math.sqrt(cin)  # matches nn.Conv2d default init range
    w = jax.random.uniform(kw, (cin, cout), jnp.float32, -bound, bound)
    b = jax.random.uniform(kb, (1, cout), jnp.float32, -bound, bound)
    return w, b


def make_transformer_head_params(key, input_dims, output_dims):
    if output_dims == 128:
        dims = [(input_dims, output_dims // 2),
                (output_dims // 2, output_dims)]
        upsample_after = 1  # Upsample sits between conv0 and conv1
    elif output_dims == 512:
        dims = [(input_dims, input_dims),
                (input_dims, output_dims // 8),
                (output_dims // 8, output_dims // 4),
                (output_dims // 4, output_dims)]
        upsample_after = 2  # Upsample sits between conv1 and conv2
    else:
        raise ValueError("output_dims must be 128 or 512")
    keys = jax.random.split(key, len(dims))
    convs = [_conv_params(k, ci, co) for k, (ci, co) in zip(keys, dims)]
    return convs, upsample_after


# Pure-jnp reference (same math, no Pallas) for the sanity check.
def reference_forward(x, convs, upsample_after):
    for i, (w, b) in enumerate(convs):
        if i == upsample_after:
            N, C, H, W = x.shape
            Ah = jnp.asarray(interp_matrix(H, 2 * H))
            Aw = jnp.asarray(interp_matrix(W, 2 * W))
            x = jnp.einsum("oh,nchw,pw->ncop", Ah, x, Aw)
        x = jnp.einsum("nchw,co->nohw", x, w) + b.reshape(1, -1, 1, 1)
        x = jnp.maximum(x, 0.0)
    return x


if __name__ == "__main__":
    key = jax.random.PRNGKey(0)
    k_x1, k_p1, k_x2, k_p2 = jax.random.split(key, 4)

    # --- output_dims == 128 branch: Conv(4->64)+ReLU, Upsample x2, Conv(64->128)+ReLU ---
    x128 = jax.random.normal(k_x1, (2, 4, 16, 16), jnp.float32)
    convs128, ua128 = make_transformer_head_params(k_p1, input_dims=4, output_dims=128)
    y128 = transformer_head_forward(x128, convs128, upsample_after=ua128)
    y128 = jax.block_until_ready(y128)
    assert y128.shape == (2, 128, 32, 32)
    ref128 = reference_forward(x128, convs128, ua128)
    assert jnp.allclose(y128, ref128, atol=1e-4, rtol=1e-4)

    # --- output_dims == 512 branch: Conv(4->4), Conv(4->64), Upsample, Conv(64->128), Conv(128->512) ---
    x512 = jax.random.normal(k_x2, (2, 4, 8, 8), jnp.float32)
    convs512, ua512 = make_transformer_head_params(k_p2, input_dims=4, output_dims=512)
    y512 = transformer_head_forward(x512, convs512, upsample_after=ua512)
    y512 = jax.block_until_ready(y512)
    assert y512.shape == (2, 512, 16, 16)
    ref512 = reference_forward(x512, convs512, ua512)
    assert jnp.allclose(y512, ref512, atol=1e-4, rtol=1e-4)

    print("KERNEL_OK")
</pallas_src>

<mosaic_0001>
module attributes {stable_mosaic.version = 11 : i64} {
  func.func @fused_head_kernel(%arg0: i32, %arg1: memref<1x256x4xf32, #tpu.memory_space<vmem>>, %arg2: memref<1024x256xf32, #tpu.memory_space<vmem>>, %arg3: memref<4x64xf32, #tpu.memory_space<vmem>>, %arg4: memref<1x64xf32, #tpu.memory_space<vmem>>, %arg5: memref<64x128xf32, #tpu.memory_space<vmem>>, %arg6: memref<1x128xf32, #tpu.memory_space<vmem>>, %arg7: memref<1x1024x128xf32, #tpu.memory_space<vmem>>) attributes {dimension_semantics = [#tpu.dimension_semantics<parallel>], iteration_bounds = array<i64: 2>, scalar_prefetch = 0 : i64, scratch_operands = 0 : i64, tpu.core_type = #tpu.core_type<tc>, window_params = [{transform_indices = @transform_0, window_bounds = array<i64: 1, 256, 4>}, {pipeline_mode = #tpu.pipeline_mode<synchronous>, transform_indices = @transform_1, window_bounds = array<i64: 1024, 256>}, {pipeline_mode = #tpu.pipeline_mode<synchronous>, transform_indices = @transform_2, window_bounds = array<i64: 4, 64>}, {pipeline_mode = #tpu.pipeline_mode<synchronous>, transform_indices = @transform_3, window_bounds = array<i64: 1, 64>}, {pipeline_mode = #tpu.pipeline_mode<synchronous>, transform_indices = @transform_4, window_bounds = array<i64: 64, 128>}, {pipeline_mode = #tpu.pipeline_mode<synchronous>, transform_indices = @transform_5, window_bounds = array<i64: 1, 128>}, {transform_indices = @transform_6, window_bounds = array<i64: 1, 1024, 128>}]} {
    %c0 = arith.constant 0 : index
    %c0_0 = arith.constant 0 : index
    %c0_1 = arith.constant 0 : index
    %0 = vector.load %arg1[%c0, %c0_0, %c0_1] : memref<1x256x4xf32, #tpu.memory_space<vmem>>, vector<1x256x4xf32>
    %1 = vector.shape_cast %0 : vector<1x256x4xf32> to vector<256x4xf32>
    %c0_2 = arith.constant 0 : index
    %c0_3 = arith.constant 0 : index
    %2 = vector.load %arg3[%c0_2, %c0_3] : memref<4x64xf32, #tpu.memory_space<vmem>>, vector<4x64xf32>
    %cst = arith.constant dense<0.000000e+00> : vector<256x64xf32>
    %3 = tpu.matmul %1, %2, %cst {dimension_numbers = #tpu.dot_dimension_numbers<[1], [0], [0], [1], [0, 0, 1, 1], [], []>} : vector<256x4xf32>, vector<4x64xf32>, vector<256x64xf32> -> vector<256x64xf32>
    %c0_4 = arith.constant 0 : index
    %c0_5 = arith.constant 0 : index
    %4 = vector.load %arg4[%c0_4, %c0_5] : memref<1x64xf32, #tpu.memory_space<vmem>>, vector<1x64xf32>
    %5 = vector.broadcast %4 : vector<1x64xf32> to vector<256x64xf32>
    %6 = arith.addf %3, %5 : vector<256x64xf32>
    %cst_6 = arith.constant 0.000000e+00 : f32
    %7 = vector.broadcast %cst_6 : f32 to vector<256x64xf32>
    %8 = arith.maximumf %6, %7 : vector<256x64xf32>
    %c0_7 = arith.constant 0 : index
    %c0_8 = arith.constant 0 : index
    %9 = vector.load %arg2[%c0_7, %c0_8] : memref<1024x256xf32, #tpu.memory_space<vmem>>, vector<1024x256xf32>
    %cst_9 = arith.constant dense<0.000000e+00> : vector<1024x64xf32>
    %10 = tpu.matmul %9, %8, %cst_9 {dimension_numbers = #tpu.dot_dimension_numbers<[1], [0], [0], [1], [0, 0, 1, 1], [], []>} : vector<1024x256xf32>, vector<256x64xf32>, vector<1024x64xf32> -> vector<1024x64xf32>
    %c0_10 = arith.constant 0 : index
    %c0_11 = arith.constant 0 : index
    %11 = vector.load %arg5[%c0_10, %c0_11] : memref<64x128xf32, #tpu.memory_space<vmem>>, vector<64x128xf32>
    %cst_12 = arith.constant dense<0.000000e+00> : vector<1024x128xf32>
    %12 = tpu.matmul %10, %11, %cst_12 {dimension_numbers = #tpu.dot_dimension_numbers<[1], [0], [0], [1], [0, 0, 1, 1], [], []>} : vector<1024x64xf32>, vector<64x128xf32>, vector<1024x128xf32> -> vector<1024x128xf32>
    %c0_13 = arith.constant 0 : index
    %c0_14 = arith.constant 0 : index
    %13 = vector.load %arg6[%c0_13, %c0_14] : memref<1x128xf32, #tpu.memory_space<vmem>>, vector<1x128xf32>
    %14 = vector.broadcast %13 : vector<1x128xf32> to vector<1024x128xf32>
    %15 = arith.addf %12, %14 : vector<1024x128xf32>
    %cst_15 = arith.constant 0.000000e+00 : f32
    %16 = vector.broadcast %cst_15 : f32 to vector<1024x128xf32>
    %17 = arith.maximumf %15, %16 : vector<1024x128xf32>
    %c0_16 = arith.constant 0 : index
    %c0_17 = arith.constant 0 : index
    %c0_18 = arith.constant 0 : index
    %18 = vector.load %arg7[%c0_16, %c0_17, %c0_18] : memref<1x1024x128xf32, #tpu.memory_space<vmem>>, vector<1x1024x128xf32>
    %19 = vector.shape_cast %18 : vector<1x1024x128xf32> to vector<1024x128xf32>
    %20 = vector.shape_cast %17 : vector<1024x128xf32> to vector<1x1024x128xf32>
    tpu.vector_store %arg7[%c0_16, %c0_17, %c0_18], %20 {strides = array<i32>} : memref<1x1024x128xf32, #tpu.memory_space<vmem>>, vector<1x1024x128xf32>,
    return
  }
  func.func @transform_0(%arg0: i32) -> (i32, i32, i32) {
    %c0_i32 = arith.constant 0 : i32
    %c0_i32_0 = arith.constant 0 : i32
    %c0_i32_1 = arith.constant 0 : i32
    return %arg0, %c0_i32, %c0_i32_0 : i32, i32, i32
  }
  func.func @transform_1(%arg0: i32) -> (i32, i32) {
    %c0_i32 = arith.constant 0 : i32
    %c0_i32_0 = arith.constant 0 : i32
    %c0_i32_1 = arith.constant 0 : i32
    return %c0_i32, %c0_i32_0 : i32, i32
  }
  func.func @transform_2(%arg0: i32) -> (i32, i32) {
    %c0_i32 = arith.constant 0 : i32
    %c0_i32_0 = arith.constant 0 : i32
    %c0_i32_1 = arith.constant 0 : i32
    return %c0_i32, %c0_i32_0 : i32, i32
  }
  func.func @transform_3(%arg0: i32) -> (i32, i32) {
    %c0_i32 = arith.constant 0 : i32
    %c0_i32_0 = arith.constant 0 : i32
    %c0_i32_1 = arith.constant 0 : i32
    return %c0_i32, %c0_i32_0 : i32, i32
  }
  func.func @transform_4(%arg0: i32) -> (i32, i32) {
    %c0_i32 = arith.constant 0 : i32
    %c0_i32_0 = arith.constant 0 : i32
    %c0_i32_1 = arith.constant 0 : i32
    return %c0_i32, %c0_i32_0 : i32, i32
  }
  func.func @transform_5(%arg0: i32) -> (i32, i32) {
    %c0_i32 = arith.constant 0 : i32
    %c0_i32_0 = arith.constant 0 : i32
    %c0_i32_1 = arith.constant 0 : i32
    return %c0_i32, %c0_i32_0 : i32, i32
  }
  func.func @transform_6(%arg0: i32) -> (i32, i32, i32) {
    %c0_i32 = arith.constant 0 : i32
    %c0_i32_0 = arith.constant 0 : i32
    %c0_i32_1 = arith.constant 0 : i32
    return %arg0, %c0_i32, %c0_i32_0 : i32, i32, i32
  }
}

</mosaic_0001>

<bundles_post_ra>
// kernel: transformer_head_forward.1
= control target key start
LH: loop header
LB: loop body
LE: loop exit
PB: predicated region body
PF: predicated region fallthrough
CT: control target
= control target key end

     0   :  { %11 = vsyncpa [#allocation3], 0  ;;  %s3976_s0 = inlined_call_operand.vmem [shape: f32[2,256,4], index: 0, kind: input, shape index: {}]   ;;  %s3977_s1 = inlined_call_operand.hbm [shape: f32[1024,256], index: 1, kind: input, shape index: {}]   ;;  %s3978_s2 = inlined_call_operand.vmem [shape: f32[4,64], index: 2, kind: input, shape index: {}]   ;;  %s3979_s3 = inlined_call_operand.vmem [shape: f32[1,64], index: 3, kind: input, shape index: {}]   ;;  %s3980_s4 = inlined_call_operand.vmem [shape: f32[64,128], index: 4, kind: input, shape index: {}]   ;;  %s3981_s5 = inlined_call_operand.vmem [shape: f32[1,128], index: 5, kind: input, shape index: {}]   ;;  %s3982_s6 = inlined_call_operand.hbm [shape: f32[2,1024,128], index: 6, kind: output, shape index: {}]  }
   0x1   :  { %12 = vsyncpa [#allocation4], 0 }
   0x2   :  { %14 = vsyncpa [#allocation4 + $0x1], 0  ;;  %s3165_s21 = smov 0   ;;  %s3167_s22 = smov 0  }
   0x3   :  { %s3169_s23 = smov 0   ;;  %s3171_s24 = smov 0  }
   0x4 LB: > { %s3186_s25 = sadd.s32 4294967295, %s3123_s24   ;;  %s2752_s26 = sadd.s32 4294967294, %s3123_s24   ;;  %s3123_s24 = sphi %s3171_s24, %s3988_s24   ;;  %s3119_s23 = sphi %s3169_s23, %s3987_s23   ;;  %s3115_s22 = sphi %s3167_s22, %s3986_s22   ;;  %s3111_s21 = sphi %s3165_s21, %s3985_s21  }
   0x5   : > { %s3190_s27 = sadd.s32 1, %s3123_s24   ;;  %s158_s28 = sadd.s32 1, %s3119_s23 }
   0x6   : > { %s155_s29 = ssub.s32 %s3123_s24, %s3190_s27  ;;  %p168_p0 = scmp.ne.s32.totalorder %s3119_s23, %s3115_s22 }
   0x7   : > { %p156_p1 = scmp.eq.s32.totalorder %s155_s29, 0  ;;  %p169_p2 = scmp.eq.s32.totalorder %s3186_s25, 1 }
   0x8   : > { %p174_p3 = scmp.ne.s32.totalorder %s3115_s22, %s3111_s21  ;;  %p175_p4 = scmp.eq.s32.totalorder %s2752_s26, 1 }
   0x9   : > { %s3201_s30 = scalar_select %p156_p1, %s3119_s23, %s158_s28  }
   0xa   : > { %p3203_p5 = por %p169_p2, %p168_p0  ;;  %p3207_p6 = por %p175_p4, %p174_p3 }
   0xb   : > { %p2753_p7 = scmp.ge.s32.totalorder %s3123_s24, 1  ;;  %p182_p8 = scmp.lt.s32.totalorder %s3123_s24, 3 }
   0xc   : > { %p2983_p9 = scmp.eq.s32.totalorder %s3186_s25, 0  ;;  %s193_s11 = sshll.u32 %s3977_s1, 4  ;;  %s194_s11 = int_to_ptr.hbm [resolvable:$true] %s193_s11 }
   0xd   : > { %p183_p10 = pnand %p2753_p7, %p182_p8  ;;  %s3125_s12 = smov [#allocation2]  }
   0xe   : > { %s195_s13 = sshll.u32 %s3125_s12, 4  ;;  %s3126_s14 = smov 256   ;;  %s196_s13 = int_to_ptr.vmem [resolvable:$true] %s195_s13 }
   0xf   : > { %p2975_p11 = pneg %p183_p10  ;;  %s3127_s15 = smov 16  }
  0x10   : > { %231 = sbr.rel (%p183_p10) target bundleno = 1794 (0x702), region = 44 }
  0x11   : > { %p2976_p12 = pnand %p2983_p9, %p2975_p11 }
  0x13   : > { %2978 = dma.hbm_to_vmem [thread:$0]  (!%p2976_p12), %s194_s11, 32768, %s196_s13, [#allocation3], %s3126_s14, %s3126_s14, %s3127_s15  }
  0x15   : > { %3102 = dma.done.wait (%p2983_p9), [#allocation3], 32768  }
  0x16   : > { %3104 = vsyncadd (%p2983_p9), [#allocation3], 4294934528  ;;  %p262_p13 = scmp.lt.s32.totalorder %s3186_s25, 1  ;;  %vm401_vm0 = vcmask 1043456   ;;  %vm304_vm1 = vcmask 31744   ;;  %vm1620_vm2 = vcmask 523264  }
  0x17   : > { %v299_v0 = vld [vmem:[%s3978_s2] sm:$0xf]  ;;  %s259_s11 = sand.u32 1, %s3115_s22  }
  0x18   : > { %s263_s16 = scalar_select %p262_p13, %s3186_s25, 1  ;;  %2761 = vmatpush.msk.msra.mxu0 %vm401_vm0, %v299_v0  ;;  %v3310_v47 = vld [vmem:[%s3979_s3] ss:$0 sm:$0xff] }
  0x19   : > { %s2758_s14 = sshll.u32 %s259_s11, 10  ;;  %s2663_s12 = scalar_lea.sflag [#allocation4], %s259_s11 }
  0x1a   : > { %s2927_s17 = sshll.u32 %s263_s16, 8  ;;  %s3555_s15 = scalar_lea.vmem [#allocation5], %s2758_s14 }
  0x1b   : > { %s3228_s20 = scalar_lea.vmem %s3976_s0, %s2927_s17  ;;  %s2675_s9 = sshll.u32 %s3555_s15, 4  ;;  %s2676_s9 = int_to_ptr.vmem [resolvable:$true] %s2675_s9 }
  0x1c   : > { %v267_v1 = vld [vmem:[%s3228_s20] sm:$0xff]  ;;  %v268_v2 = vld [vmem:[%s3228_s20 + $0x8] sm:$0xff]  ;;  %v269_v3 = vld [vmem:[%s3228_s20 + $0x10] sm:$0xff]  ;;  %s3077_s17 = scalar_lea.hbm %s3982_s6, 2048 }
  0x1d   : > { %2762 = vmatmul.msk.f32.vlgmr.msra.gmra.mxu0 %vm304_vm1, %v267_v1  ;;  %v270_v4 = vld [vmem:[%s3228_s20 + $0x18] sm:$0xff]  ;;  %v271_v5 = vld [vmem:[%s3228_s20 + $0x20] sm:$0xff]  ;;  %v272_v6 = vld [vmem:[%s3228_s20 + $0x28] sm:$0xff] }
  0x1e   : > { %v273_v7 = vld [vmem:[%s3228_s20 + $0x30] sm:$0xff]  ;;  %v274_v8 = vld [vmem:[%s3228_s20 + $0x38] sm:$0xff]  ;;  %v275_v9 = vld [vmem:[%s3228_s20 + $0x40] sm:$0xff] }
  0x1f   : > { %v276_v10 = vld [vmem:[%s3228_s20 + $0x48] sm:$0xff]  ;;  %v277_v11 = vld [vmem:[%s3228_s20 + $0x50] sm:$0xff]  ;;  %v278_v12 = vld [vmem:[%s3228_s20 + $0x58] sm:$0xff] }
  0x20   : > { %v279_v13 = vld [vmem:[%s3228_s20 + $0x60] sm:$0xff]  ;;  %v280_v14 = vld [vmem:[%s3228_s20 + $0x68] sm:$0xff]  ;;  %v281_v15 = vld [vmem:[%s3228_s20 + $0x70] sm:$0xff] }
  0x21   : > { %v282_v16 = vld [vmem:[%s3228_s20 + $0x78] sm:$0xff]  ;;  %v283_v18 = vld [vmem:[%s3228_s20 + $0x80] sm:$0xff]  ;;  %v284_v20 = vld [vmem:[%s3228_s20 + $0x88] sm:$0xff] }
  0x22   : > { %v285_v22 = vld [vmem:[%s3228_s20 + $0x90] sm:$0xff]  ;;  %v286_v24 = vld [vmem:[%s3228_s20 + $0x98] sm:$0xff]  ;;  %v287_v26 = vld [vmem:[%s3228_s20 + $0xa0] sm:$0xff] }
  0x23   : > { %v288_v28 = vld [vmem:[%s3228_s20 + $0xa8] sm:$0xff]  ;;  %v289_v30 = vld [vmem:[%s3228_s20 + $0xb0] sm:$0xff]  ;;  %v290_v32 = vld [vmem:[%s3228_s20 + $0xb8] sm:$0xff] }
  0x24   : > { %v291_v34 = vld [vmem:[%s3228_s20 + $0xc0] sm:$0xff]  ;;  %v292_v36 = vld [vmem:[%s3228_s20 + $0xc8] sm:$0xff]  ;;  %v293_v38 = vld [vmem:[%s3228_s20 + $0xd0] sm:$0xff] }
  0x25   : > { %2763 = vmatmul.msk.f32.gmra.mxu0 %vm304_vm1, %v268_v2  ;;  %v294_v40 = vld [vmem:[%s3228_s20 + $0xd8] sm:$0xff]  ;;  %v295_v42 = vld [vmem:[%s3228_s20 + $0xe0] sm:$0xff]  ;;  %v296_v44 = vld [vmem:[%s3228_s20 + $0xe8] sm:$0xff] }
  0x26   : > { %v297_v46 = vld [vmem:[%s3228_s20 + $0xf0] sm:$0xff]  ;;  %v298_v49 = vld [vmem:[%s3228_s20 + $0xf8] sm:$0xff]  ;;  %s2928_s20 = sshll.u32 %s3186_s25, 10 }
  0x27   : > { %s2674_s29 = scalar_lea.hbm %s3982_s6, %s2928_s20 }
  0x28   : > { %s2677_s10 = sshll.u32 %s2674_s29, 4  ;;  %s2678_s10 = int_to_ptr.hbm [resolvable:$true] %s2677_s10 }
  0x29   : > { %s3071_s13 = sshra.s32 %s2678_s10, 4  ;;  %s3072_s13 = int_to_ptr.hbm [resolvable:$true] %s3071_s13 }
  0x2a   : > { %s3073_s25 = scalar_lea.hbm %s3072_s13, 1024  ;;  %p3078_p3 = scmp.lt.s32.totalorder %s3072_s13, %s3982_s6 }
  0x2b   : > { %p3074_p0 = scmp.ne.s32.totalorder %s3072_s13, %s3073_s25  ;;  %p3079_p4 = scmp.lt.s32.totalorder %s3077_s17, %s3073_s25 }
  0x2d   : > { %2764 = vmatmul.msk.f32.gmra.mxu0 %vm304_vm1, %v269_v3  ;;  %p3075_p1 = pnand %p3074_p0, %p3203_p5  ;;  %p3080_p7 = por %p3079_p4, %p3078_p3 }
  0x2f   : > { %p3076_p2 = pneg %p3075_p1 }
  0x31   : > { %p3081_p8 = pnand %p3080_p7, %p3076_p2 }
  0x35   : > { %2765 = vmatmul.msk.f32.gmra.mxu0 %vm304_vm1, %v270_v4 }
  0x3d   : > { %2766 = vmatmul.msk.f32.gmra.mxu0 %vm304_vm1, %v271_v5 }
  0x45   : > { %2767 = vmatmul.msk.f32.gmra.mxu0 %vm304_vm1, %v272_v6 }
  0x4d   : > { %2768 = vmatmul.msk.f32.gmra.mxu0 %vm304_vm1, %v273_v7 }
  0x55   : > { %2769 = vmatmul.msk.f32.gmra.mxu0 %vm304_vm1, %v274_v8 }
  0x5d   : > { %2770 = vmatmul.msk.f32.gmra.mxu0 %vm304_vm1, %v275_v9 }
  0x65   : > { %2771 = vmatmul.msk.f32.gmra.mxu0 %vm304_vm1, %v276_v10 }
  0x6d   : > { %2772 = vmatmul.msk.f32.gmra.mxu0 %vm304_vm1, %v277_v11 }
  0x75   : > { %2773 = vmatmul.msk.f32.gmra.mxu0 %vm304_vm1, %v278_v12 }
  0x7d   : > { %2774 = vmatmul.msk.f32.gmra.mxu0 %vm304_vm1, %v279_v13 }
  0x85   : > { %2775 = vmatmul.msk.f32.gmra.mxu0 %vm304_vm1, %v280_v14 }
  0x8d   : > { %2776 = vmatmul.msk.f32.gmra.mxu0 %vm304_vm1, %v281_v15 }
  0x95   : > { %2777 = vmatmul.msk.f32.gmra.mxu0 %vm304_vm1, %v282_v16 }
  0x9a   : > { %v3265_v17 = vpop.f32.mrf.mxu0 }
  0x9d   : > { %2778 = vmatmul.msk.f32.gmra.mxu0 %vm304_vm1, %v283_v18  ;;  %v423_v18 = vadd.f32 %v3310_v47, %v3265_v17 }
  0xa2   : > { %v3269_v19 = vpop.f32.mrf.mxu0 }
  0xa3   : > { %v426_v15 = vadd.f32 %v3310_v47, %v3269_v19 }
  0xa5   : > { %2779 = vmatmul.msk.f32.gmra.mxu0 %vm304_vm1, %v284_v20 }
  0xaa   : > { %v3273_v21 = vpop.f32.mrf.mxu0 }
  0xab   : > { %v429_v13 = vadd.f32 %v3310_v47, %v3273_v21  ;;  %v518_v21 = vmax.f32 %v423_v18, 0.0 }
  0xad   : > { %2780 = vmatmul.msk.f32.gmra.mxu0 %vm304_vm1, %v285_v22  ;;  %v520_v20 = vmax.f32 %v429_v13, 0.0  ;;  %v519_v22 = vmax.f32 %v426_v15, 0.0  ;;  %v580_v15 = vld [vmem:[#allocation2 + $0xf0] sm:$0xff] }
  0xb2   : > { %v3277_v23 = vpop.f32.mrf.mxu0 }
  0xb3   : > { %v432_v10 = vadd.f32 %v3310_v47, %v3277_v23 }
  0xb5   : > { %2781 = vmatmul.msk.f32.gmra.mxu0 %vm304_vm1, %v286_v24  ;;  %v521_v16 = vmax.f32 %v432_v10, 0.0  ;;  %v550_v24 = vld [vmem:[#allocation2] sm:$0xff] }
  0xba   : > { %v3281_v25 = vpop.f32.mrf.mxu0 }
  0xbb   : > { %v435_v8 = vadd.f32 %v3310_v47, %v3281_v25  ;;  %v552_v25 = vld [vmem:[#allocation2 + $0x10] sm:$0xff] }
  0xbd   : > { %2782 = vmatmul.msk.f32.gmra.mxu0 %vm304_vm1, %v287_v26  ;;  %v522_v14 = vmax.f32 %v435_v8, 0.0  ;;  %v554_v26 = vld [vmem:[#allocation2 + $0x20] sm:$0xff] }
  0xc2   : > { %v3285_v27 = vpop.f32.mrf.mxu0 }
  0xc3   : > { %v438_v6 = vadd.f32 %v3310_v47, %v3285_v27 }
  0xc5   : > { %2783 = vmatmul.msk.f32.gmra.mxu0 %vm304_vm1, %v288_v28  ;;  %v523_v11 = vmax.f32 %v438_v6, 0.0  ;;  %v556_v28 = vld [vmem:[#allocation2 + $0x30] sm:$0xff] }
  0xca   : > { %v440_v29 = vpop.f32.mrf.mxu0 }
  0xcb   : > { %v441_v4 = vadd.f32 %v3310_v47, %v440_v29 }
  0xcd   : > { %2784 = vmatmul.msk.f32.gmra.mxu0 %vm304_vm1, %v289_v30  ;;  %v524_v9 = vmax.f32 %v441_v4, 0.0  ;;  %v558_v30 = vld [vmem:[#allocation2 + $0x40] sm:$0xff] }
  0xd2   : > { %v443_v31 = vpop.f32.mrf.mxu0 }
  0xd3   : > { %v444_v1 = vadd.f32 %v3310_v47, %v443_v31 }
  0xd5   : > { %2785 = vmatmul.msk.f32.gmra.mxu0 %vm304_vm1, %v290_v32  ;;  %v525_v7 = vmax.f32 %v444_v1, 0.0  ;;  %v560_v32 = vld [vmem:[#allocation2 + $0x50] sm:$0xff] }
  0xda   : > { %v446_v33 = vpop.f32.mrf.mxu0 }
  0xdb   : > { %v447_v63 = vadd.f32 %v3310_v47, %v446_v33 }
  0xdd   : > { %2786 = vmatmul.msk.f32.gmra.mxu0 %vm304_vm1, %v291_v34  ;;  %v526_v5 = vmax.f32 %v447_v63, 0.0  ;;  %v562_v34 = vld [vmem:[#allocation2 + $0x60] sm:$0xff] }
  0xe2   : > { %v449_v35 = vpop.f32.mrf.mxu0 }
  0xe3   : > { %v450_v61 = vadd.f32 %v3310_v47, %v449_v35 }
  0xe5   : > { %2787 = vmatmul.msk.f32.gmra.mxu0 %vm304_vm1, %v292_v36  ;;  %v527_v2 = vmax.f32 %v450_v61, 0.0  ;;  %v564_v36 = vld [vmem:[#allocation2 + $0x70] sm:$0xff] }
  0xea   : > { %v452_v37 = vpop.f32.mrf.mxu0 }
  0xeb   : > { %v453_v59 = vadd.f32 %v3310_v47, %v452_v37 }
  0xed   : > { %2788 = vmatmul.msk.f32.gmra.mxu0 %vm304_vm1, %v293_v38  ;;  %v528_v0 = vmax.f32 %v453_v59, 0.0  ;;  %v566_v38 = vld [vmem:[#allocation2 + $0x80] sm:$0xff]  ;;  %v576_v59 = vld [vmem:[#allocation2 + $0xd0] sm:$0xff] }
  0xf2   : > { %v455_v39 = vpop.f32.mrf.mxu0 }
  0xf3   : > { %v456_v56 = vadd.f32 %v3310_v47, %v455_v39 }
  0xf5   : > { %2789 = vmatmul.msk.f32.gmra.mxu0 %vm304_vm1, %v294_v40  ;;  %v529_v62 = vmax.f32 %v456_v56, 0.0  ;;  %v568_v40 = vld [vmem:[#allocation2 + $0x90] sm:$0xff] }
  0xfa   : > { %v458_v41 = vpop.f32.mrf.mxu0 }
  0xfb   : > { %v459_v54 = vadd.f32 %v3310_v47, %v458_v41 }
  0xfd   : > { %2790 = vmatmul.msk.f32.gmra.mxu0 %vm304_vm1, %v295_v42  ;;  %v530_v60 = vmax.f32 %v459_v54, 0.0  ;;  %v570_v42 = vld [vmem:[#allocation2 + $0xa0] sm:$0xff] }
 0x102   : > { %v461_v43 = vpop.f32.mrf.mxu0 }
 0x103   : > { %v462_v52 = vadd.f32 %v3310_v47, %v461_v43 }
 0x105   : > { %2791 = vmatmul.msk.f32.gmra.mxu0 %vm304_vm1, %v296_v44  ;;  %v531_v57 = vmax.f32 %v462_v52, 0.0  ;;  %v572_v44 = vld [vmem:[#allocation2 + $0xb0] sm:$0xff] }
 0x10a   : > { %v464_v45 = vpop.f32.mrf.mxu0 }
 0x10b   : > { %v465_v50 = vadd.f32 %v3310_v47, %v464_v45 }
 0x10d   : > { %2792 = vmatmul.msk.f32.gmra.mxu0 %vm304_vm1, %v297_v46  ;;  %v532_v55 = vmax.f32 %v465_v50, 0.0  ;;  %v574_v50 = vld [vmem:[#allocation2 + $0xc0] sm:$0xff] }
 0x112   : > { %v467_v48 = vpop.f32.mrf.mxu0 }
 0x113   : > { %v468_v51 = vadd.f32 %v3310_v47, %v467_v48 }
 0x115   : > { %2793 = vmatmul.msk.f32.gmra.mxu0 %vm304_vm1, %v298_v49  ;;  %v533_v53 = vmax.f32 %v468_v51, 0.0 }
 0x117   : > { %806 = vmatpush.msrb.mxu0 %v533_v53  ;;  %2929 = vmatpush.msra.mxu1 %v533_v53 }
 0x119   : > { %807 = vmatpush.msrb.mxu0 %v532_v55  ;;  %2930 = vmatpush.msra.mxu1 %v532_v55 }
 0x11a   : > { %v3319_v58 = vpop.f32.mrf.mxu0 }
 0x11b   : > { %808 = vmatpush.msrb.mxu0 %v531_v57  ;;  %2931 = vmatpush.msra.mxu1 %v531_v57 }
 0x11d   : > { %809 = vmatpush.msrb.mxu0 %v530_v60  ;;  %2932 = vmatpush.msra.mxu1 %v530_v60 }
 0x11f   : > { %810 = vmatpush.msrb.mxu0 %v529_v62  ;;  %2933 = vmatpush.msra.mxu1 %v529_v62 }
 0x121   : > { %811 = vmatpush.msrb.mxu0 %v528_v0  ;;  %2934 = vmatpush.msra.mxu1 %v528_v0 }
 0x122   : > { %v3325_v3 = vpop.f32.mrf.mxu0 }
 0x123   : > { %812 = vmatpush.msrb.mxu0 %v527_v2  ;;  %2935 = vmatpush.msra.mxu1 %v527_v2 }
 0x125   : > { %813 = vmatpush.msrb.mxu0 %v526_v5  ;;  %2936 = vmatpush.msra.mxu1 %v526_v5  ;;  %v578_v5 = vld [vmem:[#allocation2 + $0xe0] sm:$0xff] }
 0x127   : > { %814 = vmatpush.msrb.mxu0 %v525_v7  ;;  %2937 = vmatpush.msra.mxu1 %v525_v7 }
 0x129   : > { %815 = vmatpush.msrb.mxu0 %v524_v9  ;;  %2938 = vmatpush.msra.mxu1 %v524_v9 }
 0x12a   : > { %v3334_v12 = vpop.f32.mrf.mxu0 }
 0x12b   : > { %816 = vmatpush.msrb.mxu0 %v523_v11  ;;  %2939 = vmatpush.msra.mxu1 %v523_v11  ;;  %v477_v13 = vadd.f32 %v3310_v47, %v3334_v12 }
 0x12d   : > { %817 = vmatpush.msrb.mxu0 %v522_v14  ;;  %2940 = vmatpush.msra.mxu1 %v522_v14 }
 0x12f   : > { %818 = vmatpush.msrb.mxu0 %v521_v16  ;;  %2941 = vmatpush.msra.mxu1 %v521_v16  ;;  %v474_v16 = vadd.f32 %v3310_v47, %v3325_v3 }
 0x131   : > { %819 = vmatpush.msrb.mxu0 %v520_v20  ;;  %2942 = vmatpush.msra.mxu1 %v520_v20  ;;  %v471_v20 = vadd.f32 %v3310_v47, %v3319_v58  ;;  %v586_v58 = vld [vmem:[#allocation2 + $0x120] sm:$0xff] }
 0x132   : > { %v3342_v23 = vpop.f32.mrf.mxu0 }
 0x133   : > { %820 = vmatpush.msrb.mxu0 %v519_v22  ;;  %2943 = vmatpush.msra.mxu1 %v519_v22  ;;  %v480_v10 = vadd.f32 %v3310_v47, %v3342_v23  ;;  %v536_v22 = vmax.f32 %v477_v13, 0.0  ;;  %v535_v23 = vmax.f32 %v474_v16, 0.0  ;;  %v534_v12 = vmax.f32 %v471_v20, 0.0  ;;  %v587_v13 = vld [vmem:[#allocation2 + $0x128] sm:$0xff]  ;;  %v1615_v16 = vld [vmem:[%s3980_s4 + $0x38] sm:$0xff] }
 0x134   : > { %2961 = vmatpush.msra.mxu3 %v1615_v16  ;;  %v1613_v20 = vld [vmem:[%s3980_s4 + $0x28] sm:$0xff] }
 0x135   : > { %821 = vmatpush.msrb.mxu0 %v518_v21  ;;  %2944 = vmatpush.msra.mxu1 %v518_v21  ;;  %v537_v18 = vmax.f32 %v480_v10, 0.0  ;;  %v585_v10 = vld [vmem:[#allocation2 + $0x118] sm:$0xff] }
 0x136   : > { %822 = vmatmul.f32.vlgmr.msrb.gmra.mxu0 %v550_v24  ;;  %v582_v24 = vld [vmem:[#allocation2 + $0x100] sm:$0xff] }
 0x13a   : > { %v3344_v19 = vpop.f32.mrf.mxu0 }
 0x13b   : > { %v483_v8 = vadd.f32 %v3310_v47, %v3344_v19  ;;  %v584_v19 = vld [vmem:[#allocation2 + $0x110] sm:$0xff] }
 0x13d   : > { %v538_v14 = vmax.f32 %v483_v8, 0.0  ;;  %v583_v8 = vld [vmem:[#allocation2 + $0x108] sm:$0xff] }
 0x13e   : > { %825 = vmatmul.f32.gmra.mxu0 %v552_v25 }
 0x142   : > { %v3346_v17 = vpop.f32.mrf.mxu0 }
 0x143   : > { %v486_v6 = vadd.f32 %v3310_v47, %v3346_v17  ;;  %v588_v17 = vld [vmem:[#allocation2 + $0x130] sm:$0xff] }
 0x145   : > { %v539_v11 = vmax.f32 %v486_v6, 0.0  ;;  %v581_v6 = vld [vmem:[#allocation2 + $0xf8] sm:$0xff] }
 0x146   : > { %828 = vmatmul.f32.gmra.mxu0 %v554_v26 }
 0x14a   : > { %v488_v27 = vpop.f32.mrf.mxu0 }
 0x14b   : > { %v489_v2 = vadd.f32 %v3310_v47, %v488_v27  ;;  %v590_v27 = vld [vmem:[#allocation2 + $0x140] sm:$0xff] }
 0x14d   : > { %v540_v9 = vmax.f32 %v489_v2, 0.0 }
 0x14e   : > { %831 = vmatmul.f32.gmra.mxu0 %v556_v28 }
 0x152   : > { %v491_v29 = vpop.f32.mrf.mxu0 }
 0x153   : > { %v492_v0 = vadd.f32 %v3310_v47, %v491_v29  ;;  %v592_v29 = vld [vmem:[#allocation2 + $0x150] sm:$0xff] }
 0x155   : > { %v541_v7 = vmax.f32 %v492_v0, 0.0 }
 0x156   : > { %834 = vmatmul.f32.gmra.mxu0 %v558_v30 }
 0x15a   : > { %v494_v31 = vpop.f32.mrf.mxu0 }
 0x15b   : > { %v495_v62 = vadd.f32 %v3310_v47, %v494_v31  ;;  %v594_v31 = vld [vmem:[#allocation2 + $0x160] sm:$0xff] }
 0x15d   : > { %v542_v4 = vmax.f32 %v495_v62, 0.0 }
 0x15e   : > { %837 = vmatmul.f32.gmra.mxu0 %v560_v32 }
 0x162   : > { %v497_v33 = vpop.f32.mrf.mxu0 }
 0x163   : > { %v498_v60 = vadd.f32 %v3310_v47, %v497_v33  ;;  %v596_v33 = vld [vmem:[#allocation2 + $0x170] sm:$0xff] }
 0x165   : > { %v543_v1 = vmax.f32 %v498_v60, 0.0 }
 0x166   : > { %840 = vmatmul.f32.gmra.mxu0 %v562_v34 }
 0x16a   : > { %v500_v35 = vpop.f32.mrf.mxu0 }
 0x16b   : > { %v501_v56 = vadd.f32 %v3310_v47, %v500_v35  ;;  %v598_v35 = vld [vmem:[#allocation2 + $0x180] sm:$0xff] }
 0x16d   : > { %v544_v63 = vmax.f32 %v501_v56, 0.0  ;;  %v569_v56 = vld [vmem:[#allocation2 + $0x98] sm:$0xff] }
 0x16e   : > { %843 = vmatmul.f32.gmra.mxu0 %v564_v36 }
 0x172   : > { %v503_v37 = vpop.f32.mrf.mxu0 }
 0x173   : > { %v504_v55 = vadd.f32 %v3310_v47, %v503_v37  ;;  %v551_v37 = vld [vmem:[#allocation2 + $0x8] sm:$0xff] }
 0x175   : > { %v545_v61 = vmax.f32 %v504_v55, 0.0 }
 0x176   : > { %846 = vmatmul.f32.gmra.mxu0 %v566_v38 }
 0x17a   : > { %v506_v39 = vpop.f32.mrf.mxu0 }
 0x17b   : > { %v507_v53 = vadd.f32 %v3310_v47, %v506_v39  ;;  %v553_v39 = vld [vmem:[#allocation2 + $0x18] sm:$0xff] }
 0x17d   : > { %v546_v57 = vmax.f32 %v507_v53, 0.0 }
 0x17e   : > { %849 = vmatmul.f32.gmra.mxu0 %v568_v40 }
 0x182   : > { %v509_v41 = vpop.f32.mrf.mxu0 }
 0x183   : > { %v510_v48 = vadd.f32 %v3310_v47, %v509_v41  ;;  %v555_v41 = vld [vmem:[#allocation2 + $0x28] sm:$0xff] }
 0x185   : > { %v547_v54 = vmax.f32 %v510_v48, 0.0  ;;  %v561_v48 = vld [vmem:[#allocation2 + $0x58] sm:$0xff] }
 0x186   : > { %852 = vmatmul.f32.gmra.mxu0 %v570_v42 }
 0x18a   : > { %v512_v43 = vpop.f32.mrf.mxu0 }
 0x18b   : > { %v513_v45 = vadd.f32 %v3310_v47, %v512_v43  ;;  %v557_v43 = vld [vmem:[#allocation2 + $0x38] sm:$0xff] }
 0x18d   : > { %v548_v51 = vmax.f32 %v513_v45, 0.0  ;;  %v559_v45 = vld [vmem:[#allocation2 + $0x48] sm:$0xff] }
 0x18e   : > { %855 = vmatmul.f32.gmra.mxu0 %v572_v44 }
 0x192   : > { %v515_v46 = vpop.f32.mrf.mxu0 }
 0x193   : > { %v516_v49 = vadd.f32 %v3310_v47, %v515_v46 }
 0x195   : > { %v549_v52 = vmax.f32 %v516_v49, 0.0 }
 0x196   : > { %858 = vmatmul.f32.gmra.mxu0 %v574_v50  ;;  %v563_v50 = vld [vmem:[#allocation2 + $0x68] sm:$0xff] }
 0x197   : > { %1207 = vmatpush.msra.mxu0 %v549_v52  ;;  %2945 = vmatpush.msra.mxu2 %v549_v52  ;;  %v565_v52 = vld [vmem:[#allocation2 + $0x78] sm:$0xff] }
 0x199   : > { %1208 = vmatpush.msra.mxu0 %v548_v51  ;;  %2946 = vmatpush.msra.mxu2 %v548_v51 }
 0x19b   : > { %1209 = vmatpush.msra.mxu0 %v547_v54  ;;  %2947 = vmatpush.msra.mxu2 %v547_v54  ;;  %v567_v54 = vld [vmem:[#allocation2 + $0x88] sm:$0xff] }
 0x19d   : > { %1210 = vmatpush.msra.mxu0 %v546_v57  ;;  %2948 = vmatpush.msra.mxu2 %v546_v57 }
 0x19e   : > { %861 = vmatmul.f32.gmra.mxu0 %v576_v59  ;;  %v571_v59 = vld [vmem:[#allocation2 + $0xa8] sm:$0xff] }
 0x19f   : > { %1211 = vmatpush.msra.mxu0 %v545_v61  ;;  %2949 = vmatpush.msra.mxu2 %v545_v61  ;;  %v573_v61 = vld [vmem:[#allocation2 + $0xb8] sm:$0xff] }
 0x1a1   : > { %1212 = vmatpush.msra.mxu0 %v544_v63  ;;  %2950 = vmatpush.msra.mxu2 %v544_v63  ;;  %v575_v63 = vld [vmem:[#allocation2 + $0xc8] sm:$0xff] }
 0x1a3   : > { %1213 = vmatpush.msra.mxu0 %v543_v1  ;;  %2951 = vmatpush.msra.mxu2 %v543_v1  ;;  %v577_v1 = vld [vmem:[#allocation2 + $0xd8] sm:$0xff] }
 0x1a5   : > { %1214 = vmatpush.msra.mxu0 %v542_v4  ;;  %2952 = vmatpush.msra.mxu2 %v542_v4  ;;  %v579_v4 = vld [vmem:[#allocation2 + $0xe8] sm:$0xff] }
 0x1a6   : > { %864 = vmatmul.f32.gmra.mxu0 %v578_v5 }
 0x1a7   : > { %1215 = vmatpush.msra.mxu0 %v541_v7  ;;  %2953 = vmatpush.msra.mxu2 %v541_v7 }
 0x1a9   : > { %1216 = vmatpush.msra.mxu0 %v540_v9  ;;  %2954 = vmatpush.msra.mxu2 %v540_v9 }
 0x1ab   : > { %1217 = vmatpush.msra.mxu0 %v539_v11  ;;  %2955 = vmatpush.msra.mxu2 %v539_v11 }
 0x1ad   : > { %1218 = vmatpush.msra.mxu0 %v538_v14  ;;  %2956 = vmatpush.msra.mxu2 %v538_v14 }
 0x1ae   : > { %867 = vmatmul.f32.gmra.mxu0 %v580_v15  ;;  %v589_v15 = vld [vmem:[#allocation2 + $0x138] sm:$0xff] }
 0x1af   : > { %1219 = vmatpush.msra.mxu0 %v537_v18  ;;  %2957 = vmatpush.msra.mxu2 %v537_v18  ;;  %v1614_v18 = vld [vmem:[%s3980_s4 + $0x30] sm:$0xff] }
 0x1b0   : > { %2962 = vmatpush.msra.mxu3 %v1614_v18 }
 0x1b1   : > { %1220 = vmatpush.msra.mxu0 %v536_v22  ;;  %2958 = vmatpush.msra.mxu2 %v536_v22 }
 0x1b2   : > { %2963 = vmatpush.msra.mxu3 %v1613_v20 }
 0x1b3   : > { %v3370_v21 = vpop.f32.mrf.mxu0  ;;  %1221 = vmatpush.msra.mxu0 %v535_v23  ;;  %2959 = vmatpush.msra.mxu2 %v535_v23  ;;  %v591_v23 = vld [vmem:[#allocation2 + $0x148] sm:$0xff] }
 0x1b5   : > { %1222 = vmatpush.msra.mxu0 %v534_v12  ;;  %2960 = vmatpush.msra.mxu2 %v534_v12  ;;  %v1612_v12 = vld [vmem:[%s3980_s4 + $0x20] sm:$0xff] }
 0x1b6   : > { %870 = vmatmul.f32.gmra.mxu0 %v582_v24  ;;  %2964 = vmatpush.msra.mxu3 %v1612_v12  ;;  %v1611_v24 = vld [vmem:[%s3980_s4 + $0x18] sm:$0xff] }
 0x1b7   : > { %2013 = vmatpush.msrb.mxu0 %v1615_v16 }
 0x1b8   : > { %2965 = vmatpush.msra.mxu3 %v1611_v24 }
 0x1b9   : > { %2014 = vmatpush.msrb.mxu0 %v1614_v18  ;;  %v615_v18 = vld [vmem:[#allocation2 + $0x208] sm:$0xff] }
 0x1bb   : > { %v3372_v3 = vpop.f32.mrf.mxu0  ;;  %2015 = vmatpush.msrb.mxu0 %v1613_v20 }
 0x1bd   : > { %2016 = vmatpush.msrb.mxu0 %v1612_v12 }
 0x1be   : > { %873 = vmatmul.f32.gmra.mxu0 %v584_v19  ;;  %v1610_v19 = vld [vmem:[%s3980_s4 + $0x10] sm:$0xff] }
 0x1bf   : > { %2017 = vmatpush.msrb.mxu0 %v1611_v24  ;;  %2966 = vmatpush.msra.mxu3 %v1610_v19  ;;  %v619_v24 = vld [vmem:[#allocation2 + $0x228] sm:$0xff] }
 0x1c1   : > { %2018 = vmatpush.msrb.mxu0 %v1610_v19 }
 0x1c3   : > { %v3374_v47 = vpop.f32.mrf.mxu0 }
 0x1c6   : > { %876 = vmatmul.f32.gmra.mxu0 %v586_v58  ;;  %v601_v58 = vld [vmem:[#allocation2 + $0x198] sm:$0xff] }
 0x1c7   : > { %1298 = vmatmul.f32.vlgmr.msra.gmra.mxu2 %v601_v58  ;;  %v621_v58 = vld [vmem:[#allocation2 + $0x238] sm:$0xff] }
 0x1cb   : > { %v3376_v25 = vpop.f32.mrf.mxu0 }
 0x1ce   : > { %879 = vmatmul.f32.gmra.mxu0 %v588_v17  ;;  %v1609_v17 = vld [vmem:[%s3980_s4 + $0x8] sm:$0xff] }
 0x1cf   : > { %2019 = vmatpush.msrb.mxu0 %v1609_v17  ;;  %2967 = vmatpush.msra.mxu3 %v1609_v17 }
 0x1d3   : > { %v3378_v26 = vpop.f32.mrf.mxu0 }
 0x1d6   : > { %882 = vmatmul.f32.gmra.mxu0 %v590_v27 }
 0x1db   : > { %v3380_v28 = vpop.f32.mrf.mxu0 }
 0x1de   : > { %885 = vmatmul.f32.gmra.mxu0 %v592_v29  ;;  %v593_v29 = vld [vmem:[#allocation2 + $0x158] sm:$0xff] }
 0x1e3   : > { %v3382_v30 = vpop.f32.mrf.mxu0 }
 0x1e6   : > { %888 = vmatmul.f32.gmra.mxu0 %v594_v31  ;;  %v1608_v31 = vld [vmem:[%s3980_s4] sm:$0xff] }
 0x1e7   : > { %2020 = vmatpush.msrb.mxu0 %v1608_v31  ;;  %2968 = vmatpush.msra.mxu3 %v1608_v31 }
 0x1eb   : > { %v3384_v32 = vpop.f32.mrf.mxu0 }
 0x1ee   : > { %891 = vmatmul.f32.gmra.mxu0 %v596_v33  ;;  %v600_v33 = vld [vmem:[#allocation2 + $0x190] sm:$0xff] }
 0x1ef   : > { %897 = vmatmul.f32.vlgmr.msra.gmra.mxu1 %v600_v33  ;;  %v625_v33 = vld [vmem:[#allocation2 + $0x258] sm:$0xff] }
 0x1f3   : > { %v3386_v34 = vpop.f32.mrf.mxu0 }
 0x1f6   : > { %894 = vmatmul.f32.gmra.mxu0 %v598_v35  ;;  %v603_v35 = vld [vmem:[#allocation2 + $0x1a8] sm:$0xff] }
 0x1f7   : > { %1301 = vmatmul.f32.gmra.mxu2 %v603_v35 }
 0x1fb   : > { %v3388_v36 = vpop.f32.mrf.mxu0 }
 0x1fe   : > { %1223 = vmatmul.f32.vlgmr.msra.gmra.mxu0 %v551_v37 }
 0x203   : > { %v3390_v38 = vpop.f32.mrf.mxu0 }
 0x206   : > { %1226 = vmatmul.f32.gmra.mxu0 %v553_v39  ;;  %v595_v39 = vld [vmem:[#allocation2 + $0x168] sm:$0xff] }
 0x20b   : > { %v3392_v40 = vpop.f32.mrf.mxu0 }
 0x20e   : > { %1229 = vmatmul.f32.gmra.mxu0 %v555_v41  ;;  %v602_v41 = vld [vmem:[#allocation2 + $0x1a0] sm:$0xff] }
 0x20f   : > { %900 = vmatmul.f32.gmra.mxu1 %v602_v41 }
 0x213   : > { %v3394_v42 = vpop.f32.mrf.mxu0 }
 0x216   : > { %1232 = vmatmul.f32.gmra.mxu0 %v557_v43  ;;  %v605_v43 = vld [vmem:[#allocation2 + $0x1b8] sm:$0xff] }
 0x217   : > { %1304 = vmatmul.f32.gmra.mxu2 %v605_v43  ;;  %v626_v43 = vld [vmem:[#allocation2 + $0x260] sm:$0xff] }
 0x21b   : > { %v3396_v44 = vpop.f32.mrf.mxu0 }
 0x21e   : > { %1235 = vmatmul.f32.gmra.mxu0 %v559_v45 }
 0x223   : > { %v3398_v46 = vpop.f32.mrf.mxu0 }
 0x226   : > { %1238 = vmatmul.f32.gmra.mxu0 %v561_v48  ;;  %v597_v48 = vld [vmem:[#allocation2 + $0x178] sm:$0xff] }
 0x22b   : > { %v3400_v49 = vpop.f32.mrf.mxu0 }
 0x22e   : > { %1241 = vmatmul.f32.gmra.mxu0 %v563_v50  ;;  %v604_v50 = vld [vmem:[#allocation2 + $0x1b0] sm:$0xff] }
 0x22f   : > { %903 = vmatmul.f32.gmra.mxu1 %v604_v50  ;;  %v628_v50 = vld [vmem:[#allocation2 + $0x270] sm:$0xff] }
 0x233   : > { %v3402_v51 = vpop.f32.mrf.mxu0 }
 0x236   : > { %1244 = vmatmul.f32.gmra.mxu0 %v565_v52  ;;  %v607_v52 = vld [vmem:[#allocation2 + $0x1c8] sm:$0xff] }
 0x237   : > { %1307 = vmatmul.f32.gmra.mxu2 %v607_v52  ;;  %v631_v52 = vld [vmem:[#allocation2 + $0x288] sm:$0xff] }
 0x23b   : > { %v3404_v53 = vpop.f32.mrf.mxu0 }
 0x23e   : > { %1247 = vmatmul.f32.gmra.mxu0 %v567_v54 }
 0x243   : > { %v3406_v55 = vpop.f32.mrf.mxu0 }
 0x246   : > { %1250 = vmatmul.f32.gmra.mxu0 %v569_v56  ;;  %v599_v56 = vld [vmem:[#allocation2 + $0x188] sm:$0xff] }
 0x24b   : > { %v3408_v57 = vpop.f32.mrf.mxu0 }
 0x24e   : > { %1253 = vmatmul.f32.gmra.mxu0 %v571_v59  ;;  %v606_v59 = vld [vmem:[#allocation2 + $0x1c0] sm:$0xff] }
 0x24f   : > { %906 = vmatmul.f32.gmra.mxu1 %v606_v59  ;;  %v633_v59 = vld [vmem:[#allocation2 + $0x298] sm:$0xff] }
 0x253   : > { %v3410_v60 = vpop.f32.mrf.mxu0 }
 0x256   : > { %1256 = vmatmul.f32.gmra.mxu0 %v573_v61  ;;  %v609_v61 = vld [vmem:[#allocation2 + $0x1d8] sm:$0xff] }
 0x257   : > { %1310 = vmatmul.f32.gmra.mxu2 %v609_v61 }
 0x25b   : > { %v3412_v62 = vpop.f32.mrf.mxu0 }
 0x25e   : > { %1259 = vmatmul.f32.gmra.mxu0 %v575_v63 }
 0x263   : > { %v3414_v0 = vpop.f32.mrf.mxu0 }
 0x266   : > { %1262 = vmatmul.f32.gmra.mxu0 %v577_v1 }
 0x26b   : > { %v3416_v2 = vpop.f32.mrf.mxu0 }
 0x26e   : > { %1265 = vmatmul.f32.gmra.mxu0 %v579_v4  ;;  %v608_v4 = vld [vmem:[#allocation2 + $0x1d0] sm:$0xff] }
 0x26f   : > { %909 = vmatmul.f32.gmra.mxu1 %v608_v4  ;;  %v632_v4 = vld [vmem:[#allocation2 + $0x290] sm:$0xff] }
 0x273   : > { %v3418_v5 = vpop.f32.mrf.mxu0 }
 0x276   : > { %1268 = vmatmul.f32.gmra.mxu0 %v581_v6  ;;  %v611_v6 = vld [vmem:[#allocation2 + $0x1e8] sm:$0xff] }
 0x277   : > { %1313 = vmatmul.f32.gmra.mxu2 %v611_v6  ;;  %v635_v6 = vld [vmem:[#allocation2 + $0x2a8] sm:$0xff] }
 0x27b   : > { %v3420_v7 = vpop.f32.mrf.mxu0 }
 0x27c   : > { %v1225_v1 = vadd.f32 %v3420_v7, %v3370_v21  ;;  %v612_v7 = vld [vmem:[#allocation2 + $0x1f0] sm:$0xff] }
 0x27e   : > { %1271 = vmatmul.f32.gmra.mxu0 %v583_v8 }
 0x283   : > { %v3422_v9 = vpop.f32.mrf.mxu0 }
 0x286   : > { %1274 = vmatmul.f32.gmra.mxu0 %v585_v10  ;;  %v1228_v10 = vadd.f32 %v3422_v9, %v3372_v3  ;;  %v614_v9 = vld [vmem:[#allocation2 + $0x200] sm:$0xff] }
 0x28b   : > { %v3424_v11 = vpop.f32.mrf.mxu0 }
 0x28c   : > { %v1231_v21 = vadd.f32 %v3424_v11, %v3374_v47  ;;  %v616_v11 = vld [vmem:[#allocation2 + $0x210] sm:$0xff] }
 0x28e   : > { %1277 = vmatmul.f32.gmra.mxu0 %v587_v13  ;;  %v610_v13 = vld [vmem:[#allocation2 + $0x1e0] sm:$0xff] }
 0x28f   : > { %912 = vmatmul.f32.gmra.mxu1 %v610_v13 }
 0x293   : > { %v3426_v14 = vpop.f32.mrf.mxu0 }
 0x294   : > { %v1234_v3 = vadd.f32 %v3426_v14, %v3376_v25  ;;  %v618_v14 = vld [vmem:[#allocation2 + $0x220] sm:$0xff] }
 0x296   : > { %1280 = vmatmul.f32.gmra.mxu0 %v589_v15  ;;  %v613_v15 = vld [vmem:[#allocation2 + $0x1f8] sm:$0xff] }
 0x297   : > { %1316 = vmatmul.f32.gmra.mxu2 %v613_v15  ;;  %915 = vmatmul.f32.gmra.mxu1 %v612_v7  ;;  %v634_v15 = vld [vmem:[#allocation2 + $0x2a0] sm:$0xff] }
 0x29b   : > { %v3437_v22 = vpop.f32.mrf.mxu0 }
 0x29c   : > { %v1237_v47 = vadd.f32 %v3437_v22, %v3378_v26  ;;  %v620_v22 = vld [vmem:[#allocation2 + $0x230] sm:$0xff] }
 0x29e   : > { %1283 = vmatmul.f32.gmra.mxu0 %v591_v23  ;;  %v617_v23 = vld [vmem:[#allocation2 + $0x218] sm:$0xff] }
 0x29f   : > { %1319 = vmatmul.f32.gmra.mxu2 %v615_v18  ;;  %918 = vmatmul.f32.gmra.mxu1 %v614_v9 }
 0x2a3   : > { %v3451_v27 = vpop.f32.mrf.mxu0 }
 0x2a4   : > { %v1240_v25 = vadd.f32 %v3451_v27, %v3380_v28  ;;  %v622_v27 = vld [vmem:[#allocation2 + $0x240] sm:$0xff] }
 0x2a6   : > { %1286 = vmatmul.f32.gmra.mxu0 %v593_v29  ;;  %v623_v29 = vld [vmem:[#allocation2 + $0x248] sm:$0xff] }
 0x2a7   : > { %1322 = vmatmul.f32.gmra.mxu2 %v617_v23  ;;  %921 = vmatmul.f32.gmra.mxu1 %v616_v11  ;;  %v641_v11 = vld [vmem:[#allocation2 + $0x2d8] sm:$0xff] }
 0x2ab   : > { %v3456_v37 = vpop.f32.mrf.mxu0 }
 0x2ac   : > { %v1243_v26 = vadd.f32 %v3456_v37, %v3382_v30  ;;  %v624_v37 = vld [vmem:[#allocation2 + $0x250] sm:$0xff] }
 0x2ae   : > { %1289 = vmatmul.f32.gmra.mxu0 %v595_v39  ;;  %v627_v39 = vld [vmem:[#allocation2 + $0x268] sm:$0xff] }
 0x2af   : > { %1325 = vmatmul.f32.gmra.mxu2 %v619_v24  ;;  %924 = vmatmul.f32.gmra.mxu1 %v618_v14  ;;  %v3546_v24 = vld [vmem:[%s3981_s5] ss:$0 sm:$0xff] }
 0x2b3   : > { %v3458_v45 = vpop.f32.mrf.mxu0 }
 0x2b4   : > { %v1246_v28 = vadd.f32 %v3458_v45, %v3384_v32  ;;  %v629_v45 = vld [vmem:[#allocation2 + $0x278] sm:$0xff] }
 0x2b6   : > { %1292 = vmatmul.f32.gmra.mxu0 %v597_v48 }
 0x2b7   : > { %1328 = vmatmul.f32.gmra.mxu2 %v621_v58  ;;  %927 = vmatmul.f32.gmra.mxu1 %v620_v22  ;;  %v643_v22 = vld [vmem:[#allocation2 + $0x2e8] sm:$0xff] }
 0x2bb   : > { %v3460_v54 = vpop.f32.mrf.mxu0 }
 0x2bc   : > { %v1249_v30 = vadd.f32 %v3460_v54, %v3386_v34 }
 0x2be   : > { %1295 = vmatmul.f32.gmra.mxu0 %v599_v56  ;;  %v630_v56 = vld [vmem:[#allocation2 + $0x280] sm:$0xff] }
 0x2bf   : > { %1331 = vmatmul.f32.gmra.mxu2 %v623_v29  ;;  %930 = vmatmul.f32.gmra.mxu1 %v622_v27 }
 0x2c3   : > { %v3462_v63 = vpop.f32.mrf.mxu0 }
 0x2c4   : > { %v1252_v32 = vadd.f32 %v3462_v63, %v3388_v36 }
 0x2c6   : > { %2794 = vmatmul.msk.f32.vlgmr.msrb.gmra.mxu0 %vm1620_vm2, %v1225_v1  ;;  %v1299_v1 = vpop.f32.mrf.mxu2 }
 0x2c7   : > { %1334 = vmatmul.f32.gmra.mxu2 %v625_v33  ;;  %933 = vmatmul.f32.gmra.mxu1 %v624_v37 }
 0x2cb   : > { %v3467_v8 = vpop.f32.mrf.mxu0 }
 0x2cc   : > { %v1255_v34 = vadd.f32 %v3467_v8, %v3390_v38  ;;  %v898_v38 = vpop.f32.mrf.mxu1 }
 0x2ce   : > { %2795 = vmatmul.msk.f32.gmra.mxu0 %vm1620_vm2, %v1228_v10  ;;  %v1302_v13 = vpop.f32.mrf.mxu2 }
 0x2cf   : > { %1337 = vmatmul.f32.gmra.mxu2 %v627_v39  ;;  %936 = vmatmul.f32.gmra.mxu1 %v626_v43  ;;  %v645_v39 = vld [vmem:[#allocation2 + $0x2f8] sm:$0xff] }
 0x2d3   : > { %v3472_v16 = vpop.f32.mrf.mxu0 }
 0x2d4   : > { %v1258_v36 = vadd.f32 %v3472_v16, %v3392_v40  ;;  %v901_v8 = vpop.f32.mrf.mxu1  ;;  %v637_v16 = vld [vmem:[#allocation2 + $0x2b8] sm:$0xff] }
 0x2d5   : > { %v1303_v29 = vadd.f32 %v1302_v13, %v901_v8 }
 0x2d6   : > { %2796 = vmatmul.msk.f32.gmra.mxu0 %vm1620_vm2, %v1231_v21 }
 0x2d7   : > { %1340 = vmatmul.f32.gmra.mxu2 %v629_v45  ;;  %939 = vmatmul.f32.gmra.mxu1 %v628_v50  ;;  %v644_v50 = vld [vmem:[#allocation2 + $0x2f0] sm:$0xff] }
 0x2db   : > { %v3477_v20 = vpop.f32.mrf.mxu0 }
 0x2dc   : > { %v1261_v63 = vadd.f32 %v3477_v20, %v3394_v42  ;;  %v904_v21 = vpop.f32.mrf.mxu1  ;;  %v1305_v20 = vpop.f32.mrf.mxu2 }
 0x2de   : > { %2797 = vmatmul.msk.f32.gmra.mxu0 %vm1620_vm2, %v1234_v3  ;;  %v636_v3 = vld [vmem:[#allocation2 + $0x2b0] sm:$0xff] }
 0x2df   : > { %1343 = vmatmul.f32.gmra.mxu2 %v631_v52  ;;  %942 = vmatmul.f32.gmra.mxu1 %v630_v56 }
 0x2e3   : > { %v3482_v12 = vpop.f32.mrf.mxu0 }
 0x2e4   : > { %v1264_v10 = vadd.f32 %v3482_v12, %v3396_v44  ;;  %v639_v44 = vld [vmem:[#allocation2 + $0x2c8] sm:$0xff]  ;;  %v907_v23 = vpop.f32.mrf.mxu1 }
 0x2e6   : > { %2798 = vmatmul.msk.f32.gmra.mxu0 %vm1620_vm2, %v1237_v47  ;;  %v1308_v47 = vpop.f32.mrf.mxu2 }
 0x2e7   : > { %1346 = vmatmul.f32.gmra.mxu2 %v633_v59  ;;  %945 = vmatmul.f32.gmra.mxu1 %v632_v4  ;;  %v1309_v56 = vadd.f32 %v1308_v47, %v907_v23  ;;  %v653_v23 = vld [vmem:[#allocation2 + $0x338] sm:$0xff] }
 0x2eb   : > { %v3487_v19 = vpop.f32.mrf.mxu0 }
 0x2ec   : > { %v1267_v7 = vadd.f32 %v3487_v19, %v3398_v46 }
 0x2ee   : > { %2799 = vmatmul.msk.f32.gmra.mxu0 %vm1620_vm2, %v1240_v25  ;;  %v1311_v58 = vpop.f32.mrf.mxu2 }
 0x2ef   : > { %1349 = vmatmul.f32.gmra.mxu2 %v635_v6  ;;  %948 = vmatmul.f32.gmra.mxu1 %v634_v15  ;;  %v649_v6 = vld [vmem:[#allocation2 + $0x318] sm:$0xff] }
 0x2f3   : > { %v3492_v17 = vpop.f32.mrf.mxu0 }
 0x2f4   : > { %v1270_v12 = vadd.f32 %v3492_v17, %v3400_v49  ;;  %v1300_v49 = vadd.f32 %v1299_v1, %v898_v38  ;;  %v640_v17 = vld [vmem:[#allocation2 + $0x2d0] sm:$0xff]  ;;  %v646_v1 = vld [vmem:[#allocation2 + $0x300] sm:$0xff] }
 0x2f6   : > { %2800 = vmatmul.msk.f32.gmra.mxu0 %vm1620_vm2, %v1243_v26 }
 0x2f7   : > { %1352 = vmatmul.f32.gmra.mxu2 %v637_v16  ;;  %951 = vmatmul.f32.gmra.mxu1 %v636_v3  ;;  %v648_v16 = vld [vmem:[#allocation2 + $0x310] sm:$0xff] }
 0x2fa   : > { %v1314_v33 = vpop.f32.mrf.mxu2 }
 0x2fb   : > { %v3497_v31 = vpop.f32.mrf.mxu0 }
 0x2fc   : > { %v1273_v25 = vadd.f32 %v3497_v31, %v3402_v51 }
 0x2fe   : > { %2801 = vmatmul.msk.f32.gmra.mxu0 %vm1620_vm2, %v1246_v28 }
 0x2ff   : > { %1355 = vmatmul.f32.gmra.mxu2 %v639_v44  ;;  %v650_v44 = vld [vmem:[#allocation2 + $0x320] sm:$0xff] }
 0x303   : > { %v3502_v35 = vpop.f32.mrf.mxu0 }
 0x304   : > { %v1276_v31 = vadd.f32 %v3502_v35, %v3404_v53 }
 0x306   : > { %2802 = vmatmul.msk.f32.gmra.mxu0 %vm1620_vm2, %v1249_v30  ;;  %v642_v30 = vld [vmem:[#allocation2 + $0x2e0] sm:$0xff] }
 0x307   : > { %1358 = vmatmul.f32.gmra.mxu2 %v641_v11  ;;  %v652_v11 = vld [vmem:[#allocation2 + $0x330] sm:$0xff] }
 0x30b   : > { %v3507_v41 = vpop.f32.mrf.mxu0 }
 0x30c   : > { %v1279_v53 = vadd.f32 %v3507_v41, %v3406_v55 }
 0x30e   : > { %2803 = vmatmul.msk.f32.gmra.mxu0 %vm1620_vm2, %v1252_v32  ;;  %v1306_v32 = vadd.f32 %v1305_v20, %v904_v21  ;;  %v651_v21 = vld [vmem:[#allocation2 + $0x328] sm:$0xff] }
 0x30f   : > { %1361 = vmatmul.f32.gmra.mxu2 %v643_v22 }
 0x313   : > { %v3512_v48 = vpop.f32.mrf.mxu0 }
 0x314   : > { %v1282_v55 = vadd.f32 %v3512_v48, %v3408_v57 }
 0x316   : > { %2804 = vmatmul.msk.f32.gmra.mxu0 %vm1620_vm2, %v1255_v34 }
 0x317   : > { %1364 = vmatmul.f32.gmra.mxu2 %v645_v39 }
 0x31a   : > { %v1317_v34 = vpop.f32.mrf.mxu2 }
 0x31b   : > { %v3517_v54 = vpop.f32.mrf.mxu0 }
 0x31c   : > { %v1285_v57 = vadd.f32 %v3517_v54, %v3410_v60 }
 0x31e   : > { %2805 = vmatmul.msk.f32.gmra.mxu0 %vm1620_vm2, %v1258_v36  ;;  %v647_v36 = vld [vmem:[#allocation2 + $0x308] sm:$0xff] }
 0x31f   : > { %1367 = vmatmul.f32.gmra.mxu2 %v647_v36 }
 0x323   : > { %v3522_v61 = vpop.f32.mrf.mxu0 }
 0x324   : > { %v1288_v60 = vadd.f32 %v3522_v61, %v3412_v62 }
 0x326   : > { %2806 = vmatmul.msk.f32.gmra.mxu0 %vm1620_vm2, %v1261_v63  ;;  %v1320_v63 = vpop.f32.mrf.mxu2 }
 0x327   : > { %1370 = vmatmul.f32.gmra.mxu2 %v649_v6 }
 0x32b   : > { %v3527_v40 = vpop.f32.mrf.mxu0 }
 0x32c   : > { %v1291_v62 = vadd.f32 %v3527_v40, %v3414_v0  ;;  %v654_v40 = vld [vmem:[#allocation2 + $0x340] sm:$0xff] }
 0x32e   : > { %2807 = vmatmul.msk.f32.gmra.mxu0 %vm1620_vm2, %v1264_v10  ;;  %v1323_v15 = vpop.f32.mrf.mxu2 }
 0x32f   : > { %1373 = vmatmul.f32.gmra.mxu2 %v651_v21 }
 0x333   : > { %v1293_v42 = vpop.f32.mrf.mxu0 }
 0x334   : > { %v1294_v18 = vadd.f32 %v1293_v42, %v3416_v2  ;;  %v638_v2 = vld [vmem:[#allocation2 + $0x2c0] sm:$0xff] }
 0x335   : > { %954 = vmatmul.f32.gmra.mxu1 %v638_v2 }
 0x336   : > { %2808 = vmatmul.msk.f32.gmra.mxu0 %vm1620_vm2, %v1267_v7  ;;  %2817 = vmatmul.msk.f32.vlgmr.msra.gmra.mxu3 %vm1620_vm2, %v1294_v18  ;;  %v1326_v3 = vpop.f32.mrf.mxu2 }
 0x337   : > { %1376 = vmatmul.f32.gmra.mxu2 %v653_v23  ;;  %v666_v23 = vld [vmem:[#allocation2 + $0x3a0] sm:$0xff] }
 0x33b   : > { %v1296_v9 = vpop.f32.mrf.mxu0 }
 0x33c   : > { %v1297_v46 = vadd.f32 %v1296_v9, %v3418_v5  ;;  %v910_v5 = vpop.f32.mrf.mxu1 }
 0x33d   : > { %957 = vmatmul.f32.gmra.mxu1 %v640_v17  ;;  %v1312_v8 = vadd.f32 %v1311_v58, %v910_v5 }
 0x33e   : > { %2809 = vmatmul.msk.f32.gmra.mxu0 %vm1620_vm2, %v1270_v12  ;;  %2818 = vmatmul.msk.f32.gmra.mxu3 %vm1620_vm2, %v1297_v46  ;;  %v1329_v2 = vpop.f32.mrf.mxu2 }
 0x343   : > { %v2022_v19 = vpop.f32.mrf.mxu0 }
 0x344   : > { %v2023_v14 = vadd.f32 %v3546_v24, %v2022_v19  ;;  %v913_v51 = vpop.f32.mrf.mxu1  ;;  %v655_v19 = vld [vmem:[#allocation2 + $0x348] sm:$0xff] }
 0x345   : > { %960 = vmatmul.f32.gmra.mxu1 %v642_v30  ;;  %v1315_v7 = vadd.f32 %v1314_v33, %v913_v51  ;;  %1379 = vmatmul.f32.gmra.mxu2 %v655_v19  ;;  %v659_v30 = vld [vmem:[#allocation2 + $0x368] sm:$0xff] }
 0x346   : > { %v2406_v26 = vmax.f32 %v2023_v14, 0.0  ;;  %2810 = vmatmul.msk.f32.gmra.mxu0 %vm1620_vm2, %v1273_v25  ;;  %2819 = vmatmul.msk.f32.gmra.mxu3 %vm1620_vm2, %v1300_v49  ;;  %v1332_v0 = vpop.f32.mrf.mxu2 }
 0x348   : > { %2534 = vst [vmem:[%s3555_s15] sm:$0xff] %v2406_v26  ;;  %v657_v26 = vld [vmem:[#allocation2 + $0x358] sm:$0xff] }
 0x34b   : > { %v2025_v28 = vpop.f32.mrf.mxu0 }
 0x34c   : > { %v2026_v27 = vadd.f32 %v3546_v24, %v2025_v28  ;;  %v916_v45 = vpop.f32.mrf.mxu1 }
 0x34d   : > { %963 = vmatmul.f32.gmra.mxu1 %v644_v50  ;;  %v1318_v12 = vadd.f32 %v1317_v34, %v916_v45  ;;  %1382 = vmatmul.f32.gmra.mxu2 %v657_v26  ;;  %v661_v34 = vld [vmem:[#allocation2 + $0x378] sm:$0xff] }
 0x34e   : > { %v2407_v37 = vmax.f32 %v2026_v27, 0.0  ;;  %2811 = vmatmul.msk.f32.gmra.mxu0 %vm1620_vm2, %v1276_v31  ;;  %2820 = vmatmul.msk.f32.gmra.mxu3 %vm1620_vm2, %v1303_v29  ;;  %v1335_v31 = vpop.f32.mrf.mxu2  ;;  %v656_v27 = vld [vmem:[#allocation2 + $0x350] sm:$0xff] }
 0x350   : > { %2535 = vst [vmem:[%s3555_s15 + $0x8] sm:$0xff] %v2407_v37 }
 0x353   : > { %v2028_v43 = vpop.f32.mrf.mxu0 }
 0x354   : > { %v2029_v35 = vadd.f32 %v3546_v24, %v2028_v43  ;;  %v919_v38 = vpop.f32.mrf.mxu1 }
 0x355   : > { %966 = vmatmul.f32.gmra.mxu1 %v646_v1  ;;  %v1321_v5 = vadd.f32 %v1320_v63, %v919_v38  ;;  %1385 = vmatmul.f32.gmra.mxu2 %v659_v30  ;;  %v660_v38 = vld [vmem:[#allocation2 + $0x370] sm:$0xff] }
 0x356   : > { %v2408_v52 = vmax.f32 %v2029_v35, 0.0  ;;  %2812 = vmatmul.msk.f32.gmra.mxu0 %vm1620_vm2, %v1279_v53  ;;  %2821 = vmatmul.msk.f32.gmra.mxu3 %vm1620_vm2, %v1306_v32  ;;  %v1338_v45 = vpop.f32.mrf.mxu2  ;;  %v658_v53 = vld [vmem:[#allocation2 + $0x360] sm:$0xff] }
 0x358   : > { %2536 = vst [vmem:[%s3555_s15 + $0x10] sm:$0xff] %v2408_v52 }
 0x35b   : > { %v2031_v59 = vpop.f32.mrf.mxu0 }
 0x35c   : > { %v2032_v41 = vadd.f32 %v3546_v24, %v2031_v59  ;;  %v922_v13 = vpop.f32.mrf.mxu1 }
 0x35d   : > { %969 = vmatmul.f32.gmra.mxu1 %v648_v16  ;;  %v1324_v22 = vadd.f32 %v1323_v15, %v922_v13  ;;  %1388 = vmatmul.f32.gmra.mxu2 %v661_v34 }
 0x35e   : > { %v2409_v4 = vmax.f32 %v2032_v41, 0.0  ;;  %2813 = vmatmul.msk.f32.gmra.mxu0 %vm1620_vm2, %v1282_v55  ;;  %2822 = vmatmul.msk.f32.gmra.mxu3 %vm1620_vm2, %v1309_v56  ;;  %v1341_v59 = vpop.f32.mrf.mxu2  ;;  %v663_v41 = vld [vmem:[#allocation2 + $0x388] sm:$0xff] }
 0x360   : > { %2537 = vst [vmem:[%s3555_s15 + $0x18] sm:$0xff] %v2409_v4 }
 0x363   : > { %v2034_v10 = vpop.f32.mrf.mxu0 }
 0x364   : > { %v2035_v48 = vadd.f32 %v3546_v24, %v2034_v10  ;;  %v925_v20 = vpop.f32.mrf.mxu1  ;;  %v662_v10 = vld [vmem:[#allocation2 + $0x380] sm:$0xff] }
 0x365   : > { %972 = vmatmul.f32.gmra.mxu1 %v650_v44  ;;  %v1327_v37 = vadd.f32 %v1326_v3, %v925_v20  ;;  %1391 = vmatmul.f32.gmra.mxu2 %v663_v41  ;;  %v667_v20 = vld [vmem:[#allocation2 + $0x3a8] sm:$0xff]  ;;  %v674_v41 = vld [vmem:[#allocation2 + $0x3e0] sm:$0xff] }
 0x366   : > { %v2410_v42 = vmax.f32 %v2035_v48, 0.0  ;;  %2814 = vmatmul.msk.f32.gmra.mxu0 %vm1620_vm2, %v1285_v57  ;;  %2823 = vmatmul.msk.f32.gmra.mxu3 %vm1620_vm2, %v1312_v8  ;;  %v1344_v8 = vpop.f32.mrf.mxu2  ;;  %v665_v57 = vld [vmem:[#allocation2 + $0x398] sm:$0xff] }
 0x368   : > { %2538 = vst [vmem:[%s3555_s15 + $0x20] sm:$0xff] %v2410_v42 }
 0x36b   : > { %v2037_v18 = vpop.f32.mrf.mxu0 }
 0x36c   : > { %v2038_v54 = vadd.f32 %v3546_v24, %v2037_v18  ;;  %v928_v47 = vpop.f32.mrf.mxu1 }
 0x36d   : > { %975 = vmatmul.f32.gmra.mxu1 %v652_v11  ;;  %v1330_v50 = vadd.f32 %v1329_v2, %v928_v47  ;;  %1394 = vmatmul.f32.gmra.mxu2 %v665_v57 }
 0x36e   : > { %v2411_v9 = vmax.f32 %v2038_v54, 0.0  ;;  %2815 = vmatmul.msk.f32.gmra.mxu0 %vm1620_vm2, %v1288_v60  ;;  %2824 = vmatmul.msk.f32.gmra.mxu3 %vm1620_vm2, %v1315_v7  ;;  %v1347_v21 = vpop.f32.mrf.mxu2  ;;  %v664_v7 = vld [vmem:[#allocation2 + $0x390] sm:$0xff] }
 0x370   : > { %2539 = vst [vmem:[%s3555_s15 + $0x28] sm:$0xff] %v2411_v9 }
 0x373   : > { %v2040_v46 = vpop.f32.mrf.mxu0 }
 0x374   : > { %v2041_v61 = vadd.f32 %v3546_v24, %v2040_v46  ;;  %v931_v14 = vpop.f32.mrf.mxu1  ;;  %v669_v46 = vld [vmem:[#allocation2 + $0x3b8] sm:$0xff] }
 0x375   : > { %978 = vmatmul.f32.gmra.mxu1 %v654_v40  ;;  %v1333_v63 = vadd.f32 %v1332_v0, %v931_v14  ;;  %1397 = vmatmul.f32.gmra.mxu2 %v667_v20 }
 0x376   : > { %v2412_v49 = vmax.f32 %v2041_v61, 0.0  ;;  %2816 = vmatmul.msk.f32.gmra.mxu0 %vm1620_vm2, %v1291_v62  ;;  %2825 = vmatmul.msk.f32.gmra.mxu3 %vm1620_vm2, %v1318_v12  ;;  %v1350_v9 = vpop.f32.mrf.mxu2 }
 0x378   : > { %2540 = vst [vmem:[%s3555_s15 + $0x30] sm:$0xff] %v2412_v49  ;;  %v668_v49 = vld [vmem:[#allocation2 + $0x3b0] sm:$0xff] }
 0x37b   : > { %v2043_v25 = vpop.f32.mrf.mxu0 }
 0x37c   : > { %v2044_v58 = vadd.f32 %v3546_v24, %v2043_v25  ;;  %v934_v28 = vpop.f32.mrf.mxu1 }
 0x37d   : > { %981 = vmatmul.f32.gmra.mxu1 %v656_v27  ;;  %v1336_v48 = vadd.f32 %v1335_v31, %v934_v28  ;;  %1400 = vmatmul.f32.gmra.mxu2 %v669_v46  ;;  %v681_v46 = vld [vmem:[#allocation2 + $0x418] sm:$0xff] }
 0x37e   : > { %v2413_v17 = vmax.f32 %v2044_v58, 0.0  ;;  %2826 = vmatmul.msk.f32.gmra.mxu3 %vm1620_vm2, %v1321_v5  ;;  %v1353_v11 = vpop.f32.mrf.mxu2  ;;  %v671_v5 = vld [vmem:[#allocation2 + $0x3c8] sm:$0xff] }
 0x380   : > { %2541 = vst [vmem:[%s3555_s15 + $0x38] sm:$0xff] %v2413_v17 }
 0x383   : > { %v2046_v29 = vpop.f32.mrf.mxu0 }
 0x384   : > { %v2047_v51 = vadd.f32 %v3546_v24, %v2046_v29  ;;  %v937_v32 = vpop.f32.mrf.mxu1  ;;  %v670_v29 = vld [vmem:[#allocation2 + $0x3c0] sm:$0xff] }
 0x385   : > { %984 = vmatmul.f32.gmra.mxu1 %v658_v53  ;;  %v1339_v60 = vadd.f32 %v1338_v45, %v937_v32  ;;  %1403 = vmatmul.f32.gmra.mxu2 %v671_v5  ;;  %v672_v45 = vld [vmem:[#allocation2 + $0x3d0] sm:$0xff] }
 0x386   : > { %v2414_v33 = vmax.f32 %v2047_v51, 0.0  ;;  %2827 = vmatmul.msk.f32.gmra.mxu3 %vm1620_vm2, %v1324_v22  ;;  %v1356_v22 = vpop.f32.mrf.mxu2  ;;  %v673_v51 = vld [vmem:[#allocation2 + $0x3d8] sm:$0xff] }
 0x388   : > { %2542 = vst [vmem:[%s3555_s15 + $0x40] sm:$0xff] %v2414_v33 }
 0x38b   : > { %v2049_v39 = vpop.f32.mrf.mxu0 }
 0x38c   : > { %v2050_v43 = vadd.f32 %v3546_v24, %v2049_v39  ;;  %v940_v36 = vpop.f32.mrf.mxu1 }
 0x38d   : > { %987 = vmatmul.f32.gmra.mxu1 %v660_v38  ;;  %v1342_v47 = vadd.f32 %v1341_v59, %v940_v36  ;;  %1406 = vmatmul.f32.gmra.mxu2 %v673_v51 }
 0x38e   : > { %v2415_v35 = vmax.f32 %v2050_v43, 0.0  ;;  %2828 = vmatmul.msk.f32.gmra.mxu3 %vm1620_vm2, %v1327_v37  ;;  %v1359_v43 = vpop.f32.mrf.mxu2 }
 0x390   : > { %2543 = vst [vmem:[%s3555_s15 + $0x48] sm:$0xff] %v2415_v35  ;;  %v675_v35 = vld [vmem:[#allocation2 + $0x3e8] sm:$0xff] }
 0x393   : > { %v2052_v52 = vpop.f32.mrf.mxu0 }
 0x394   : > { %v2053_v56 = vadd.f32 %v3546_v24, %v2052_v52  ;;  %v943_v4 = vpop.f32.mrf.mxu1 }
 0x395   : > { %990 = vmatmul.f32.gmra.mxu1 %v662_v10  ;;  %v1345_v58 = vadd.f32 %v1344_v8, %v943_v4  ;;  %1409 = vmatmul.f32.gmra.mxu2 %v675_v35 }
 0x396   : > { %v2416_v55 = vmax.f32 %v2053_v56, 0.0  ;;  %2829 = vmatmul.msk.f32.gmra.mxu3 %vm1620_vm2, %v1330_v50 }
 0x398   : > { %2544 = vst [vmem:[%s3555_s15 + $0x50] sm:$0xff] %v2416_v55  ;;  %v1362_v55 = vpop.f32.mrf.mxu2 }
 0x39b   : > { %v2055_v1 = vpop.f32.mrf.mxu0 }
 0x39c   : > { %v2056_v6 = vadd.f32 %v3546_v24, %v2055_v1  ;;  %v946_v16 = vpop.f32.mrf.mxu1  ;;  %v677_v1 = vld [vmem:[#allocation2 + $0x3f8] sm:$0xff] }
 0x39d   : > { %993 = vmatmul.f32.gmra.mxu1 %v664_v7  ;;  %v1348_v33 = vadd.f32 %v1347_v21, %v946_v16  ;;  %1412 = vmatmul.f32.gmra.mxu2 %v677_v1  ;;  %v676_v16 = vld [vmem:[#allocation2 + $0x3f0] sm:$0xff]  ;;  %v679_v21 = vld [vmem:[#allocation2 + $0x408] sm:$0xff]  ;;  %v689_v1 = vld [vmem:[#allocation2 + $0x458] sm:$0xff] }
 0x39e   : > { %v2417_v13 = vmax.f32 %v2056_v6, 0.0  ;;  %2830 = vmatmul.msk.f32.gmra.mxu3 %vm1620_vm2, %v1333_v63 }
 0x3a0   : > { %2545 = vst [vmem:[%s3555_s15 + $0x58] sm:$0xff] %v2417_v13 }
 0x3a3   : > { %v2058_v15 = vpop.f32.mrf.mxu0 }
 0x3a4   : > { %v2059_v42 = vadd.f32 %v3546_v24, %v2058_v15  ;;  %v949_v3 = vpop.f32.mrf.mxu1  ;;  %v1365_v15 = vpop.f32.mrf.mxu2 }
 0x3a5   : > { %996 = vmatmul.f32.gmra.mxu1 %v666_v23  ;;  %v1351_v52 = vadd.f32 %v1350_v9, %v949_v3  ;;  %1415 = vmatmul.f32.gmra.mxu2 %v679_v21  ;;  %v678_v23 = vld [vmem:[#allocation2 + $0x400] sm:$0xff] }
 0x3a6   : > { %v2418_v18 = vmax.f32 %v2059_v42, 0.0  ;;  %2831 = vmatmul.msk.f32.gmra.mxu3 %vm1620_vm2, %v1336_v48 }
 0x3a8   : > { %2546 = vst [vmem:[%s3555_s15 + $0x60] sm:$0xff] %v2418_v18 }
 0x3ab   : > { %v2061_v54 = vpop.f32.mrf.mxu0 }
 0x3ac   : > { %v2062_v44 = vadd.f32 %v3546_v24, %v2061_v54  ;;  %v952_v2 = vpop.f32.mrf.mxu1  ;;  %v1368_v9 = vpop.f32.mrf.mxu2 }
 0x3ad   : > { %999 = vmatmul.f32.gmra.mxu1 %v668_v49  ;;  %v1354_v8 = vadd.f32 %v1353_v11, %v952_v2  ;;  %1418 = vmatmul.f32.gmra.mxu2 %v681_v46 }
 0x3ae   : > { %v2419_v12 = vmax.f32 %v2062_v44, 0.0  ;;  %2832 = vmatmul.msk.f32.gmra.mxu3 %vm1620_vm2, %v1339_v60 }
 0x3b0   : > { %2547 = vst [vmem:[%s3555_s15 + $0x68] sm:$0xff] %v2419_v12 }
 0x3b3   : > { %v2064_v62 = vpop.f32.mrf.mxu0 }
 0x3b4   : > { %v2065_v61 = vadd.f32 %v3546_v24, %v2064_v62  ;;  %v955_v26 = vpop.f32.mrf.mxu1  ;;  %v1371_v5 = vpop.f32.mrf.mxu2 }
 0x3b5   : > { %1002 = vmatmul.f32.gmra.mxu1 %v670_v29  ;;  %v1357_v20 = vadd.f32 %v1356_v22, %v955_v26 }
 0x3b6   : > { %v2420_v19 = vmax.f32 %v2065_v61, 0.0  ;;  %2833 = vmatmul.msk.f32.gmra.mxu3 %vm1620_vm2, %v1342_v47 }
 0x3b8   : > { %2548 = vst [vmem:[%s3555_s15 + $0x70] sm:$0xff] %v2420_v19 }
 0x3b9   : > { %v2091_v25 = vpop.f32.mrf.mxu3 }
 0x3ba   : > { %v2092_v14 = vadd.f32 %v3546_v24, %v2091_v25  ;;  %v680_v25 = vld [vmem:[#allocation2 + $0x410] sm:$0xff] }
 0x3bb   : > { %v2067_v0 = vpop.f32.mrf.mxu0 }
 0x3bc   : > { %v2068_v40 = vadd.f32 %v3546_v24, %v2067_v0  ;;  %v2429_v17 = vmax.f32 %v2092_v14, 0.0  ;;  %v958_v32 = vpop.f32.mrf.mxu1  ;;  %v1374_v51 = vpop.f32.mrf.mxu2 }
 0x3bd   : > { %1005 = vmatmul.f32.gmra.mxu1 %v672_v45  ;;  %v1360_v61 = vadd.f32 %v1359_v43, %v958_v32 }
 0x3be   : > { %v2421_v28 = vmax.f32 %v2068_v40, 0.0  ;;  %2557 = vst [vmem:[%s3555_s15 + $0xb8] sm:$0xff] %v2429_v17  ;;  %2834 = vmatmul.msk.f32.gmra.mxu3 %vm1620_vm2, %v1345_v58  ;;  %v683_v58 = vld [vmem:[#allocation2 + $0x428] sm:$0xff] }
 0x3bf   : > { %1421 = vmatmul.f32.gmra.mxu2 %v683_v58 }
 0x3c0   : > { %2549 = vst [vmem:[%s3555_s15 + $0x78] sm:$0xff] %v2421_v28 }
 0x3c1   : > { %v2094_v31 = vpop.f32.mrf.mxu3 }
 0x3c2   : > { %v2095_v27 = vadd.f32 %v3546_v24, %v2094_v31  ;;  %v682_v31 = vld [vmem:[#allocation2 + $0x420] sm:$0xff] }
 0x3c3   : > { %v2070_v30 = vpop.f32.mrf.mxu0 }
 0x3c4   : > { %v2071_v37 = vadd.f32 %v3546_v24, %v2070_v30  ;;  %v2430_v39 = vmax.f32 %v2095_v27, 0.0  ;;  %v961_v38 = vpop.f32.mrf.mxu1  ;;  %v1377_v35 = vpop.f32.mrf.mxu2 }
 0x3c5   : > { %1008 = vmatmul.f32.gmra.mxu1 %v674_v41  ;;  %v1363_v17 = vadd.f32 %v1362_v55, %v961_v38 }
 0x3c6   : > { %v2422_v53 = vmax.f32 %v2071_v37, 0.0  ;;  %2558 = vst [vmem:[%s3555_s15 + $0xc0] sm:$0xff] %v2430_v39  ;;  %2835 = vmatmul.msk.f32.gmra.mxu3 %vm1620_vm2, %v1348_v33  ;;  %v685_v33 = vld [vmem:[#allocation2 + $0x438] sm:$0xff] }
 0x3c7   : > { %1424 = vmatmul.f32.gmra.mxu2 %v685_v33 }
 0x3c8   : > { %2550 = vst [vmem:[%s3555_s15 + $0x80] sm:$0xff] %v2422_v53 }
 0x3c9   : > { %v2097_v34 = vpop.f32.mrf.mxu3 }
 0x3ca   : > { %v2098_v50 = vadd.f32 %v3546_v24, %v2097_v34  ;;  %v684_v34 = vld [vmem:[#allocation2 + $0x430] sm:$0xff] }
 0x3cb   : > { %v2073_v36 = vpop.f32.mrf.mxu0 }
 0x3cc   : > { %v2074_v56 = vadd.f32 %v3546_v24, %v2073_v36  ;;  %v2431_v59 = vmax.f32 %v2098_v50, 0.0  ;;  %v964_v48 = vpop.f32.mrf.mxu1  ;;  %v1380_v41 = vpop.f32.mrf.mxu2 }
 0x3cd   : > { %1011 = vmatmul.f32.gmra.mxu1 %v676_v16  ;;  %v1366_v39 = vadd.f32 %v1365_v15, %v964_v48  ;;  %v688_v48 = vld [vmem:[#allocation2 + $0x450] sm:$0xff]  ;;  %v691_v15 = vld [vmem:[#allocation2 + $0x468] sm:$0xff] }
 0x3ce   : > { %v2423_v63 = vmax.f32 %v2074_v56, 0.0  ;;  %2559 = vst [vmem:[%s3555_s15 + $0xc8] sm:$0xff] %v2431_v59  ;;  %2836 = vmatmul.msk.f32.gmra.mxu3 %vm1620_vm2, %v1351_v52  ;;  %v687_v52 = vld [vmem:[#allocation2 + $0x448] sm:$0xff] }
 0x3cf   : > { %1427 = vmatmul.f32.gmra.mxu2 %v687_v52  ;;  %v700_v52 = vld [vmem:[#allocation2 + $0x4b0] sm:$0xff] }
 0x3d0   : > { %2551 = vst [vmem:[%s3555_s15 + $0x88] sm:$0xff] %v2423_v63  ;;  %v686_v63 = vld [vmem:[#allocation2 + $0x440] sm:$0xff] }
 0x3d1   : > { %v2100_v4 = vpop.f32.mrf.mxu3 }
 0x3d2   : > { %v2101_v6 = vadd.f32 %v3546_v24, %v2100_v4 }
 0x3d3   : > { %v2076_v10 = vpop.f32.mrf.mxu0 }
 0x3d4   : > { %v2077_v13 = vadd.f32 %v3546_v24, %v2076_v10  ;;  %v2432_v57 = vmax.f32 %v2101_v6, 0.0  ;;  %v967_v44 = vpop.f32.mrf.mxu1 }
 0x3d5   : > { %1014 = vmatmul.f32.gmra.mxu1 %v678_v23  ;;  %v1369_v59 = vadd.f32 %v1368_v9, %v967_v44 }
 0x3d6   : > { %v2424_v42 = vmax.f32 %v2077_v13, 0.0  ;;  %2560 = vst [vmem:[%s3555_s15 + $0xd0] sm:$0xff] %v2432_v57  ;;  %2837 = vmatmul.msk.f32.gmra.mxu3 %vm1620_vm2, %v1354_v8  ;;  %v1383_v57 = vpop.f32.mrf.mxu2 }
 0x3d7   : > { %1430 = vmatmul.f32.gmra.mxu2 %v689_v1  ;;  %v702_v1 = vld [vmem:[#allocation2 + $0x4c0] sm:$0xff] }
 0x3d8   : > { %2552 = vst [vmem:[%s3555_s15 + $0x90] sm:$0xff] %v2424_v42 }
 0x3d9   : > { %v2103_v7 = vpop.f32.mrf.mxu3 }
 0x3da   : > { %v2104_v18 = vadd.f32 %v3546_v24, %v2103_v7 }
 0x3db   : > { %v2079_v60 = vpop.f32.mrf.mxu0 }
 0x3dc   : > { %v2080_v54 = vadd.f32 %v3546_v24, %v2079_v60  ;;  %v2433_v3 = vmax.f32 %v2104_v18, 0.0  ;;  %v970_v19 = vpop.f32.mrf.mxu1  ;;  %v690_v60 = vld [vmem:[#allocation2 + $0x460] sm:$0xff] }
 0x3dd   : > { %1017 = vmatmul.f32.gmra.mxu1 %v680_v25  ;;  %v1372_v8 = vadd.f32 %v1371_v5, %v970_v19  ;;  %v694_v25 = vld [vmem:[#allocation2 + $0x480] sm:$0xff] }
 0x3de   : > { %v2425_v12 = vmax.f32 %v2080_v54, 0.0  ;;  %2561 = vst [vmem:[%s3555_s15 + $0xd8] sm:$0xff] %v2433_v3  ;;  %2838 = vmatmul.msk.f32.gmra.mxu3 %vm1620_vm2, %v1357_v20  ;;  %v1386_v20 = vpop.f32.mrf.mxu2  ;;  %v693_v54 = vld [vmem:[#allocation2 + $0x478] sm:$0xff] }
 0x3df   : > { %1433 = vmatmul.f32.gmra.mxu2 %v691_v15  ;;  %v704_v15 = vld [vmem:[#allocation2 + $0x4d0] sm:$0xff] }
 0x3e0   : > { %2553 = vst [vmem:[%s3555_s15 + $0x98] sm:$0xff] %v2425_v12 }
 0x3e1   : > { %v2106_v47 = vpop.f32.mrf.mxu3 }
 0x3e2   : > { %v2107_v62 = vadd.f32 %v3546_v24, %v2106_v47  ;;  %v692_v47 = vld [vmem:[#allocation2 + $0x470] sm:$0xff] }
 0x3e3   : > { %v2082_v2 = vpop.f32.mrf.mxu0 }
 0x3e4   : > { %v2083_v11 = vadd.f32 %v3546_v24, %v2082_v2  ;;  %v2434_v49 = vmax.f32 %v2107_v62, 0.0  ;;  %v973_v28 = vpop.f32.mrf.mxu1  ;;  %v695_v62 = vld [vmem:[#allocation2 + $0x488] sm:$0xff] }
 0x3e5   : > { %1020 = vmatmul.f32.gmra.mxu1 %v682_v31  ;;  %v1375_v21 = vadd.f32 %v1374_v51, %v973_v28  ;;  %v699_v28 = vld [vmem:[#allocation2 + $0x4a8] sm:$0xff] }
 0x3e6   : > { %v2426_v14 = vmax.f32 %v2083_v11, 0.0  ;;  %2562 = vst [vmem:[%s3555_s15 + $0xe0] sm:$0xff] %v2434_v49  ;;  %2839 = vmatmul.msk.f32.gmra.mxu3 %vm1620_vm2, %v1360_v61  ;;  %v1389_v46 = vpop.f32.mrf.mxu2 }
 0x3e7   : > { %1436 = vmatmul.f32.gmra.mxu2 %v693_v54  ;;  %v706_v54 = vld [vmem:[#allocation2 + $0x4e0] sm:$0xff] }
 0x3e8   : > { %2554 = vst [vmem:[%s3555_s15 + $0xa0] sm:$0xff] %v2426_v14  ;;  %v697_v14 = vld [vmem:[#allocation2 + $0x498] sm:$0xff] }
 0x3e9   : > { %v2109_v0 = vpop.f32.mrf.mxu3 }
 0x3ea   : > { %v2110_v40 = vadd.f32 %v3546_v24, %v2109_v0 }
 0x3eb   : > { %v2085_v26 = vpop.f32.mrf.mxu0 }
 0x3ec   : > { %v2086_v22 = vadd.f32 %v3546_v24, %v2085_v26  ;;  %v2435_v29 = vmax.f32 %v2110_v40, 0.0  ;;  %v976_v53 = vpop.f32.mrf.mxu1 }
 0x3ed   : > { %1023 = vmatmul.f32.gmra.mxu1 %v684_v34  ;;  %v1378_v9 = vadd.f32 %v1377_v35, %v976_v53 }
 0x3ee   : > { %v2427_v27 = vmax.f32 %v2086_v22, 0.0  ;;  %2563 = vst [vmem:[%s3555_s15 + $0xe8] sm:$0xff] %v2435_v29  ;;  %2840 = vmatmul.msk.f32.gmra.mxu3 %vm1620_vm2, %v1363_v17  ;;  %v1392_v5 = vpop.f32.mrf.mxu2  ;;  %v696_v29 = vld [vmem:[#allocation2 + $0x490] sm:$0xff] }
 0x3ef   : > { %1439 = vmatmul.f32.gmra.mxu2 %v695_v62  ;;  %v708_v62 = vld [vmem:[#allocation2 + $0x4f0] sm:$0xff] }
 0x3f0   : > { %2555 = vst [vmem:[%s3555_s15 + $0xa8] sm:$0xff] %v2427_v27 }
 0x3f1   : > { %v2112_v30 = vpop.f32.mrf.mxu3 }
 0x3f2   : > { %v2113_v37 = vadd.f32 %v3546_v24, %v2112_v30 }
 0x3f3   : > { %v2088_v32 = vpop.f32.mrf.mxu0 }
 0x3f4   : > { %v2089_v43 = vadd.f32 %v3546_v24, %v2088_v32  ;;  %v2436_v45 = vmax.f32 %v2113_v37, 0.0  ;;  %v979_v55 = vpop.f32.mrf.mxu1  ;;  %v701_v32 = vld [vmem:[#allocation2 + $0x4b8] sm:$0xff] }
 0x3f5   : > { %1026 = vmatmul.f32.gmra.mxu1 %v686_v63  ;;  %v1381_v11 = vadd.f32 %v1380_v41, %v979_v55 }
 0x3f6   : > { %v2428_v50 = vmax.f32 %v2089_v43, 0.0  ;;  %2564 = vst [vmem:[%s3555_s15 + $0xf0] sm:$0xff] %v2436_v45  ;;  %2841 = vmatmul.msk.f32.gmra.mxu3 %vm1620_vm2, %v1366_v39  ;;  %v1395_v22 = vpop.f32.mrf.mxu2  ;;  %v698_v39 = vld [vmem:[#allocation2 + $0x4a0] sm:$0xff] }
 0x3f7   : > { %1442 = vmatmul.f32.gmra.mxu2 %v697_v14  ;;  %v710_v14 = vld [vmem:[#allocation2 + $0x500] sm:$0xff] }
 0x3f8   : > { %2556 = vst [vmem:[%s3555_s15 + $0xb0] sm:$0xff] %v2428_v50 }
 0x3f9   : > { %v2115_v36 = vpop.f32.mrf.mxu3 }
 0x3fa   : > { %v2116_v56 = vadd.f32 %v3546_v24, %v2115_v36  ;;  %v703_v36 = vld [vmem:[#allocation2 + $0x4c8] sm:$0xff] }
 0x3fc   : > { %v2437_v38 = vmax.f32 %v2116_v56, 0.0  ;;  %v982_v13 = vpop.f32.mrf.mxu1 }
 0x3fd   : > { %1029 = vmatmul.f32.gmra.mxu1 %v688_v48  ;;  %v1384_v40 = vadd.f32 %v1383_v57, %v982_v13 }
 0x3fe   : > { %2565 = vst [vmem:[%s3555_s15 + $0xf8] sm:$0xff] %v2437_v38  ;;  %2842 = vmatmul.msk.f32.gmra.mxu3 %vm1620_vm2, %v1369_v59  ;;  %v1398_v37 = vpop.f32.mrf.mxu2 }
 0x3ff   : > { %1445 = vmatmul.f32.gmra.mxu2 %v699_v28  ;;  %v712_v28 = vld [vmem:[#allocation2 + $0x510] sm:$0xff] }
 0x401   : > { %v2118_v4 = vpop.f32.mrf.mxu3 }
 0x402   : > { %v2119_v6 = vadd.f32 %v3546_v24, %v2118_v4  ;;  %v705_v4 = vld [vmem:[#allocation2 + $0x4d8] sm:$0xff] }
 0x404   : > { %v2438_v10 = vmax.f32 %v2119_v6, 0.0  ;;  %v985_v18 = vpop.f32.mrf.mxu1 }
 0x405   : > { %1032 = vmatmul.f32.gmra.mxu1 %v690_v60  ;;  %v1387_v27 = vadd.f32 %v1386_v20, %v985_v18 }
 0x406   : > { %2566 = vst [vmem:[%s3555_s15 + $0x100] sm:$0xff] %v2438_v10  ;;  %2843 = vmatmul.msk.f32.gmra.mxu3 %vm1620_vm2, %v1372_v8  ;;  %v1401_v50 = vpop.f32.mrf.mxu2 }
 0x407   : > { %1448 = vmatmul.f32.gmra.mxu2 %v701_v32  ;;  %v714_v32 = vld [vmem:[#allocation2 + $0x520] sm:$0xff] }
 0x409   : > { %v2121_v16 = vpop.f32.mrf.mxu3 }
 0x40a   : > { %v2122_v42 = vadd.f32 %v3546_v24, %v2121_v16  ;;  %v707_v16 = vld [vmem:[#allocation2 + $0x4e8] sm:$0xff] }
 0x40c   : > { %v2439_v7 = vmax.f32 %v2122_v42, 0.0  ;;  %v988_v12 = vpop.f32.mrf.mxu1 }
 0x40d   : > { %1035 = vmatmul.f32.gmra.mxu1 %v692_v47  ;;  %v1390_v53 = vadd.f32 %v1389_v46, %v988_v12 }
 0x40e   : > { %2567 = vst [vmem:[%s3555_s15 + $0x108] sm:$0xff] %v2439_v7  ;;  %2844 = vmatmul.msk.f32.gmra.mxu3 %vm1620_vm2, %v1375_v21  ;;  %v1404_v63 = vpop.f32.mrf.mxu2 }
 0x40f   : > { %1451 = vmatmul.f32.gmra.mxu2 %v703_v36  ;;  %v716_v36 = vld [vmem:[#allocation2 + $0x530] sm:$0xff] }
 0x411   : > { %v2124_v3 = vpop.f32.mrf.mxu3 }
 0x412   : > { %v2125_v44 = vadd.f32 %v3546_v24, %v2124_v3  ;;  %v709_v3 = vld [vmem:[#allocation2 + $0x4f8] sm:$0xff] }
 0x414   : > { %v2440_v23 = vmax.f32 %v2125_v44, 0.0  ;;  %v991_v19 = vpop.f32.mrf.mxu1 }
 0x415   : > { %1038 = vmatmul.f32.gmra.mxu1 %v694_v25  ;;  %v1393_v38 = vadd.f32 %v1392_v5, %v991_v19 }
 0x416   : > { %2568 = vst [vmem:[%s3555_s15 + $0x110] sm:$0xff] %v2440_v23  ;;  %2845 = vmatmul.msk.f32.gmra.mxu3 %vm1620_vm2, %v1378_v9  ;;  %v1407_v48 = vpop.f32.mrf.mxu2 }
 0x417   : > { %1454 = vmatmul.f32.gmra.mxu2 %v705_v4  ;;  %v718_v4 = vld [vmem:[#allocation2 + $0x540] sm:$0xff] }
 0x419   : > { %v2127_v61 = vpop.f32.mrf.mxu3 }
 0x41a   : > { %v2128_v2 = vadd.f32 %v3546_v24, %v2127_v61  ;;  %v711_v61 = vld [vmem:[#allocation2 + $0x508] sm:$0xff] }
 0x41c   : > { %v2441_v49 = vmax.f32 %v2128_v2, 0.0  ;;  %v994_v26 = vpop.f32.mrf.mxu1 }
 0x41d   : > { %1041 = vmatmul.f32.gmra.mxu1 %v696_v29  ;;  %v1396_v10 = vadd.f32 %v1395_v22, %v994_v26 }
 0x41e   : > { %2569 = vst [vmem:[%s3555_s15 + $0x118] sm:$0xff] %v2441_v49  ;;  %2846 = vmatmul.msk.f32.gmra.mxu3 %vm1620_vm2, %v1381_v11  ;;  %v1410_v60 = vpop.f32.mrf.mxu2 }
 0x41f   : > { %1457 = vmatmul.f32.gmra.mxu2 %v707_v16  ;;  %v720_v16 = vld [vmem:[#allocation2 + $0x550] sm:$0xff] }
 0x421   : > { %v2130_v58 = vpop.f32.mrf.mxu3 }
 0x422   : > { %v2131_v0 = vadd.f32 %v3546_v24, %v2130_v58  ;;  %v713_v58 = vld [vmem:[#allocation2 + $0x518] sm:$0xff] }
 0x424   : > { %v2442_v17 = vmax.f32 %v2131_v0, 0.0  ;;  %v997_v30 = vpop.f32.mrf.mxu1 }
 0x425   : > { %1044 = vmatmul.f32.gmra.mxu1 %v698_v39  ;;  %v1399_v7 = vadd.f32 %v1398_v37, %v997_v30 }
 0x426   : > { %2570 = vst [vmem:[%s3555_s15 + $0x120] sm:$0xff] %v2442_v17  ;;  %2847 = vmatmul.msk.f32.gmra.mxu3 %vm1620_vm2, %v1384_v40  ;;  %v1413_v47 = vpop.f32.mrf.mxu2 }
 0x427   : > { %1460 = vmatmul.f32.gmra.mxu2 %v709_v3  ;;  %v722_v3 = vld [vmem:[#allocation2 + $0x560] sm:$0xff] }
 0x429   : > { %v2133_v51 = vpop.f32.mrf.mxu3 }
 0x42a   : > { %v2134_v31 = vadd.f32 %v3546_v24, %v2133_v51  ;;  %v715_v51 = vld [vmem:[#allocation2 + $0x528] sm:$0xff] }
 0x42c   : > { %v2443_v33 = vmax.f32 %v2134_v31, 0.0  ;;  %v1000_v34 = vpop.f32.mrf.mxu1 }
 0x42d   : > { %1047 = vmatmul.f32.gmra.mxu1 %v700_v52  ;;  %v1402_v23 = vadd.f32 %v1401_v50, %v1000_v34 }
 0x42e   : > { %2571 = vst [vmem:[%s3555_s15 + $0x128] sm:$0xff] %v2443_v33  ;;  %2848 = vmatmul.msk.f32.gmra.mxu3 %vm1620_vm2, %v1387_v27  ;;  %v1416_v25 = vpop.f32.mrf.mxu2 }
 0x42f   : > { %1463 = vmatmul.f32.gmra.mxu2 %v711_v61  ;;  %v724_v61 = vld [vmem:[#allocation2 + $0x570] sm:$0xff] }
 0x431   : > { %v2136_v43 = vpop.f32.mrf.mxu3 }
 0x432   : > { %v2137_v45 = vadd.f32 %v3546_v24, %v2136_v43  ;;  %v717_v43 = vld [vmem:[#allocation2 + $0x538] sm:$0xff] }
 0x434   : > { %v2444_v35 = vmax.f32 %v2137_v45, 0.0  ;;  %v1003_v41 = vpop.f32.mrf.mxu1 }
 0x435   : > { %1050 = vmatmul.f32.gmra.mxu1 %v702_v1  ;;  %v1405_v49 = vadd.f32 %v1404_v63, %v1003_v41 }
 0x436   : > { %2572 = vst [vmem:[%s3555_s15 + $0x130] sm:$0xff] %v2444_v35  ;;  %2849 = vmatmul.msk.f32.gmra.mxu3 %vm1620_vm2, %v1390_v53  ;;  %v1419_v29 = vpop.f32.mrf.mxu2 }
 0x437   : > { %1466 = vmatmul.f32.gmra.mxu2 %v713_v58  ;;  %v726_v58 = vld [vmem:[#allocation2 + $0x580] sm:$0xff] }
 0x439   : > { %v2139_v56 = vpop.f32.mrf.mxu3 }
 0x43a   : > { %v2140_v59 = vadd.f32 %v3546_v24, %v2139_v56  ;;  %v719_v56 = vld [vmem:[#allocation2 + $0x548] sm:$0xff] }
 0x43c   : > { %v2445_v55 = vmax.f32 %v2140_v59, 0.0  ;;  %v1006_v57 = vpop.f32.mrf.mxu1 }
 0x43d   : > { %1053 = vmatmul.f32.gmra.mxu1 %v704_v15  ;;  %v1408_v17 = vadd.f32 %v1407_v48, %v1006_v57 }
 0x43e   : > { %2573 = vst [vmem:[%s3555_s15 + $0x138] sm:$0xff] %v2445_v55  ;;  %2850 = vmatmul.msk.f32.gmra.mxu3 %vm1620_vm2, %v1393_v38  ;;  %v3709_v38 = vld [vmem:[%s3981_s5] ss:$0 sm:$0xff] }
 0x43f   : > { %1469 = vmatmul.f32.gmra.mxu2 %v715_v51  ;;  %v728_v51 = vld [vmem:[#allocation2 + $0x590] sm:$0xff] }
 0x441   : > { %v2142_v6 = vpop.f32.mrf.mxu3 }
 0x442   : > { %v2143_v8 = vadd.f32 %v3546_v24, %v2142_v6  ;;  %v1422_v39 = vpop.f32.mrf.mxu2  ;;  %v721_v6 = vld [vmem:[#allocation2 + $0x558] sm:$0xff] }
 0x444   : > { %v2446_v13 = vmax.f32 %v2143_v8, 0.0  ;;  %v1009_v20 = vpop.f32.mrf.mxu1 }
 0x445   : > { %1056 = vmatmul.f32.gmra.mxu1 %v706_v54  ;;  %v1411_v33 = vadd.f32 %v1410_v60, %v1009_v20 }
 0x446   : > { %2574 = vst [vmem:[%s3555_s15 + $0x140] sm:$0xff] %v2446_v13  ;;  %2851 = vmatmul.msk.f32.gmra.mxu3 %vm1620_vm2, %v1396_v10 }
 0x447   : > { %1472 = vmatmul.f32.gmra.mxu2 %v717_v43  ;;  %v730_v43 = vld [vmem:[#allocation2 + $0x5a0] sm:$0xff] }
 0x449   : > { %v2145_v42 = vpop.f32.mrf.mxu3 }
 0x44a   : > { %v2146_v21 = vadd.f32 %v3546_v24, %v2145_v42  ;;  %v1425_v52 = vpop.f32.mrf.mxu2  ;;  %v723_v42 = vld [vmem:[#allocation2 + $0x568] sm:$0xff] }
 0x44c   : > { %v2447_v18 = vmax.f32 %v2146_v21, 0.0  ;;  %v1012_v46 = vpop.f32.mrf.mxu1 }
 0x44d   : > { %1059 = vmatmul.f32.gmra.mxu1 %v708_v62  ;;  %v1414_v35 = vadd.f32 %v1413_v47, %v1012_v46 }
 0x44e   : > { %2575 = vst [vmem:[%s3555_s15 + $0x148] sm:$0xff] %v2447_v18  ;;  %2852 = vmatmul.msk.f32.gmra.mxu3 %vm1620_vm2, %v1399_v7 }
 0x44f   : > { %1475 = vmatmul.f32.gmra.mxu2 %v719_v56  ;;  %v732_v56 = vld [vmem:[#allocation2 + $0x5b0] sm:$0xff] }
 0x451   : > { %v2148_v44 = vpop.f32.mrf.mxu3 }
 0x452   : > { %v2149_v9 = vadd.f32 %v3546_v24, %v2148_v44  ;;  %v1428_v1 = vpop.f32.mrf.mxu2  ;;  %v725_v44 = vld [vmem:[#allocation2 + $0x578] sm:$0xff] }
 0x454   : > { %v2448_v12 = vmax.f32 %v2149_v9, 0.0  ;;  %v1015_v5 = vpop.f32.mrf.mxu1 }
 0x455   : > { %1062 = vmatmul.f32.gmra.mxu1 %v710_v14  ;;  %v1417_v55 = vadd.f32 %v1416_v25, %v1015_v5 }
 0x456   : > { %2576 = vst [vmem:[%s3555_s15 + $0x150] sm:$0xff] %v2448_v12  ;;  %2853 = vmatmul.msk.f32.gmra.mxu3 %vm1620_vm2, %v1402_v23 }
 0x457   : > { %1478 = vmatmul.f32.gmra.mxu2 %v721_v6  ;;  %v734_v6 = vld [vmem:[#allocation2 + $0x5c0] sm:$0xff] }
 0x459   : > { %v2151_v2 = vpop.f32.mrf.mxu3 }
 0x45a   : > { %v2152_v11 = vadd.f32 %v3546_v24, %v2151_v2  ;;  %v1431_v15 = vpop.f32.mrf.mxu2  ;;  %v727_v2 = vld [vmem:[#allocation2 + $0x588] sm:$0xff] }
 0x45c   : > { %v2449_v19 = vmax.f32 %v2152_v11, 0.0  ;;  %v1018_v22 = vpop.f32.mrf.mxu1 }
 0x45d   : > { %1065 = vmatmul.f32.gmra.mxu1 %v712_v28  ;;  %v1420_v13 = vadd.f32 %v1419_v29, %v1018_v22 }
 0x45e   : > { %2577 = vst [vmem:[%s3555_s15 + $0x158] sm:$0xff] %v2449_v19  ;;  %2854 = vmatmul.msk.f32.gmra.mxu3 %vm1620_vm2, %v1405_v49 }
 0x45f   : > { %1481 = vmatmul.f32.gmra.mxu2 %v723_v42  ;;  %v736_v42 = vld [vmem:[#allocation2 + $0x5d0] sm:$0xff] }
 0x461   : > { %v2154_v0 = vpop.f32.mrf.mxu3 }
 0x462   : > { %v2155_v40 = vadd.f32 %v3546_v24, %v2154_v0  ;;  %v1434_v54 = vpop.f32.mrf.mxu2  ;;  %v729_v0 = vld [vmem:[#allocation2 + $0x598] sm:$0xff] }
 0x464   : > { %v2450_v26 = vmax.f32 %v2155_v40, 0.0  ;;  %v1021_v37 = vpop.f32.mrf.mxu1 }
 0x465   : > { %1068 = vmatmul.f32.gmra.mxu1 %v714_v32  ;;  %v1423_v18 = vadd.f32 %v1422_v39, %v1021_v37 }
 0x466   : > { %2578 = vst [vmem:[%s3555_s15 + $0x160] sm:$0xff] %v2450_v26  ;;  %2855 = vmatmul.msk.f32.gmra.mxu3 %vm1620_vm2, %v1408_v17 }
 0x467   : > { %1484 = vmatmul.f32.gmra.mxu2 %v725_v44  ;;  %v738_v44 = vld [vmem:[#allocation2 + $0x5e0] sm:$0xff] }
 0x469   : > { %v2157_v31 = vpop.f32.mrf.mxu3 }
 0x46a   : > { %v2158_v27 = vadd.f32 %v3546_v24, %v2157_v31  ;;  %v1437_v62 = vpop.f32.mrf.mxu2  ;;  %v731_v31 = vld [vmem:[#allocation2 + $0x5a8] sm:$0xff] }
 0x46c   : > { %v2451_v30 = vmax.f32 %v2158_v27, 0.0  ;;  %v1024_v50 = vpop.f32.mrf.mxu1 }
 0x46d   : > { %1071 = vmatmul.f32.gmra.mxu1 %v716_v36  ;;  %v1426_v12 = vadd.f32 %v1425_v52, %v1024_v50 }
 0x46e   : > { %2579 = vst [vmem:[%s3555_s15 + $0x168] sm:$0xff] %v2451_v30  ;;  %2856 = vmatmul.msk.f32.gmra.mxu3 %vm1620_vm2, %v1411_v33 }
 0x46f   : > { %1487 = vmatmul.f32.gmra.mxu2 %v727_v2  ;;  %v740_v2 = vld [vmem:[#allocation2 + $0x5f0] sm:$0xff] }
 0x471   : > { %v2160_v45 = vpop.f32.mrf.mxu3 }
 0x472   : > { %v2161_v53 = vadd.f32 %v3546_v24, %v2160_v45  ;;  %v1440_v14 = vpop.f32.mrf.mxu2  ;;  %v733_v45 = vld [vmem:[#allocation2 + $0x5b8] sm:$0xff] }
 0x474   : > { %v2452_v34 = vmax.f32 %v2161_v53, 0.0  ;;  %v1027_v63 = vpop.f32.mrf.mxu1 }
 0x475   : > { %1074 = vmatmul.f32.gmra.mxu1 %v718_v4  ;;  %v1429_v19 = vadd.f32 %v1428_v1, %v1027_v63 }
 0x476   : > { %2580 = vst [vmem:[%s3555_s15 + $0x170] sm:$0xff] %v2452_v34  ;;  %2857 = vmatmul.msk.f32.gmra.mxu3 %vm1620_vm2, %v1414_v35 }
 0x477   : > { %1490 = vmatmul.f32.gmra.mxu2 %v729_v0  ;;  %v742_v0 = vld [vmem:[#allocation2 + $0x600] sm:$0xff] }
 0x479   : > { %v2163_v59 = vpop.f32.mrf.mxu3 }
 0x47a   : > { %v2164_v24 = vadd.f32 %v3709_v38, %v2163_v59  ;;  %v1443_v28 = vpop.f32.mrf.mxu2  ;;  %v735_v59 = vld [vmem:[#allocation2 + $0x5c8] sm:$0xff] }
 0x47c   : > { %v2453_v41 = vmax.f32 %v2164_v24, 0.0  ;;  %v1030_v48 = vpop.f32.mrf.mxu1 }
 0x47d   : > { %1077 = vmatmul.f32.gmra.mxu1 %v720_v16  ;;  %v1432_v26 = vadd.f32 %v1431_v15, %v1030_v48 }
 0x47e   : > { %2581 = vst [vmem:[%s3555_s15 + $0x178] sm:$0xff] %v2453_v41  ;;  %2858 = vmatmul.msk.f32.gmra.mxu3 %vm1620_vm2, %v1417_v55 }
 0x47f   : > { %1493 = vmatmul.f32.gmra.mxu2 %v731_v31  ;;  %v744_v31 = vld [vmem:[#allocation2 + $0x610] sm:$0xff] }
 0x481   : > { %v2166_v8 = vpop.f32.mrf.mxu3 }
 0x482   : > { %v2167_v10 = vadd.f32 %v3709_v38, %v2166_v8  ;;  %v1446_v32 = vpop.f32.mrf.mxu2  ;;  %v737_v8 = vld [vmem:[#allocation2 + $0x5d8] sm:$0xff] }
 0x484   : > { %v2454_v57 = vmax.f32 %v2167_v10, 0.0  ;;  %v1033_v60 = vpop.f32.mrf.mxu1 }
 0x485   : > { %1080 = vmatmul.f32.gmra.mxu1 %v722_v3  ;;  %v1435_v30 = vadd.f32 %v1434_v54, %v1033_v60 }
 0x486   : > { %2582 = vst [vmem:[%s3555_s15 + $0x180] sm:$0xff] %v2454_v57  ;;  %2859 = vmatmul.msk.f32.gmra.mxu3 %vm1620_vm2, %v1420_v13 }
 0x487   : > { %1496 = vmatmul.f32.gmra.mxu2 %v733_v45  ;;  %v746_v45 = vld [vmem:[#allocation2 + $0x620] sm:$0xff] }
 0x489   : > { %v2169_v21 = vpop.f32.mrf.mxu3 }
 0x48a   : > { %v2170_v7 = vadd.f32 %v3709_v38, %v2169_v21  ;;  %v1449_v36 = vpop.f32.mrf.mxu2  ;;  %v739_v21 = vld [vmem:[#allocation2 + $0x5e8] sm:$0xff] }
 0x48c   : > { %v2455_v20 = vmax.f32 %v2170_v7, 0.0  ;;  %v1036_v47 = vpop.f32.mrf.mxu1 }
 0x48d   : > { %1083 = vmatmul.f32.gmra.mxu1 %v724_v61  ;;  %v1438_v34 = vadd.f32 %v1437_v62, %v1036_v47 }
 0x48e   : > { %2583 = vst [vmem:[%s3555_s15 + $0x188] sm:$0xff] %v2455_v20  ;;  %2860 = vmatmul.msk.f32.gmra.mxu3 %vm1620_vm2, %v1423_v18 }
 0x48f   : > { %1499 = vmatmul.f32.gmra.mxu2 %v735_v59  ;;  %v748_v59 = vld [vmem:[#allocation2 + $0x630] sm:$0xff] }
 0x491   : > { %v2172_v9 = vpop.f32.mrf.mxu3 }
 0x492   : > { %v2173_v23 = vadd.f32 %v3709_v38, %v2172_v9  ;;  %v1452_v4 = vpop.f32.mrf.mxu2  ;;  %v741_v9 = vld [vmem:[#allocation2 + $0x5f8] sm:$0xff] }
 0x494   : > { %v2456_v46 = vmax.f32 %v2173_v23, 0.0  ;;  %v1039_v25 = vpop.f32.mrf.mxu1 }
 0x495   : > { %1086 = vmatmul.f32.gmra.mxu1 %v726_v58  ;;  %v1441_v41 = vadd.f32 %v1440_v14, %v1039_v25 }
 0x496   : > { %2584 = vst [vmem:[%s3555_s15 + $0x190] sm:$0xff] %v2456_v46  ;;  %2861 = vmatmul.msk.f32.gmra.mxu3 %vm1620_vm2, %v1426_v12 }
 0x497   : > { %1502 = vmatmul.f32.gmra.mxu2 %v737_v8  ;;  %v750_v8 = vld [vmem:[#allocation2 + $0x640] sm:$0xff] }
 0x499   : > { %v2175_v11 = vpop.f32.mrf.mxu3 }
 0x49a   : > { %v2176_v49 = vadd.f32 %v3709_v38, %v2175_v11  ;;  %v1455_v16 = vpop.f32.mrf.mxu2  ;;  %v743_v11 = vld [vmem:[#allocation2 + $0x608] sm:$0xff] }
 0x49c   : > { %v2457_v5 = vmax.f32 %v2176_v49, 0.0  ;;  %v1042_v29 = vpop.f32.mrf.mxu1 }
 0x49d   : > { %1089 = vmatmul.f32.gmra.mxu1 %v728_v51  ;;  %v1444_v57 = vadd.f32 %v1443_v28, %v1042_v29 }
 0x49e   : > { %2585 = vst [vmem:[%s3555_s15 + $0x198] sm:$0xff] %v2457_v5  ;;  %2862 = vmatmul.msk.f32.gmra.mxu3 %vm1620_vm2, %v1429_v19 }
 0x49f   : > { %1505 = vmatmul.f32.gmra.mxu2 %v739_v21  ;;  %v752_v21 = vld [vmem:[#allocation2 + $0x650] sm:$0xff] }
 0x4a1   : > { %v2178_v40 = vpop.f32.mrf.mxu3 }
 0x4a2   : > { %v2179_v17 = vadd.f32 %v3709_v38, %v2178_v40  ;;  %v1458_v3 = vpop.f32.mrf.mxu2  ;;  %v745_v40 = vld [vmem:[#allocation2 + $0x618] sm:$0xff] }
 0x4a4   : > { %v2458_v22 = vmax.f32 %v2179_v17, 0.0  ;;  %v1045_v39 = vpop.f32.mrf.mxu1 }
 0x4a5   : > { %1092 = vmatmul.f32.gmra.mxu1 %v730_v43  ;;  %v1447_v20 = vadd.f32 %v1446_v32, %v1045_v39 }
 0x4a6   : > { %2586 = vst [vmem:[%s3555_s15 + $0x1a0] sm:$0xff] %v2458_v22  ;;  %2863 = vmatmul.msk.f32.gmra.mxu3 %vm1620_vm2, %v1432_v26 }
 0x4a7   : > { %1508 = vmatmul.f32.gmra.mxu2 %v741_v9  ;;  %v754_v9 = vld [vmem:[#allocation2 + $0x660] sm:$0xff] }
 0x4a9   : > { %v2181_v27 = vpop.f32.mrf.mxu3 }
 0x4aa   : > { %v2182_v33 = vadd.f32 %v3709_v38, %v2181_v27  ;;  %v1461_v61 = vpop.f32.mrf.mxu2  ;;  %v747_v27 = vld [vmem:[#allocation2 + $0x628] sm:$0xff] }
 0x4ac   : > { %v2459_v37 = vmax.f32 %v2182_v33, 0.0  ;;  %v1048_v52 = vpop.f32.mrf.mxu1 }
 0x4ad   : > { %1095 = vmatmul.f32.gmra.mxu1 %v732_v56  ;;  %v1450_v46 = vadd.f32 %v1449_v36, %v1048_v52 }
 0x4ae   : > { %2587 = vst [vmem:[%s3555_s15 + $0x1a8] sm:$0xff] %v2459_v37  ;;  %2864 = vmatmul.msk.f32.gmra.mxu3 %vm1620_vm2, %v1435_v30 }
 0x4af   : > { %1511 = vmatmul.f32.gmra.mxu2 %v743_v11  ;;  %v756_v11 = vld [vmem:[#allocation2 + $0x670] sm:$0xff] }
 0x4b1   : > { %v2184_v53 = vpop.f32.mrf.mxu3 }
 0x4b2   : > { %v2185_v35 = vadd.f32 %v3709_v38, %v2184_v53  ;;  %v1464_v58 = vpop.f32.mrf.mxu2  ;;  %v749_v53 = vld [vmem:[#allocation2 + $0x638] sm:$0xff] }
 0x4b4   : > { %v2460_v50 = vmax.f32 %v2185_v35, 0.0  ;;  %v1051_v1 = vpop.f32.mrf.mxu1 }
 0x4b5   : > { %1098 = vmatmul.f32.gmra.mxu1 %v734_v6  ;;  %v1453_v5 = vadd.f32 %v1452_v4, %v1051_v1 }
 0x4b6   : > { %2588 = vst [vmem:[%s3555_s15 + $0x1b0] sm:$0xff] %v2460_v50  ;;  %2865 = vmatmul.msk.f32.gmra.mxu3 %vm1620_vm2, %v1438_v34 }
 0x4b7   : > { %1514 = vmatmul.f32.gmra.mxu2 %v745_v40  ;;  %v758_v40 = vld [vmem:[#allocation2 + $0x680] sm:$0xff] }
 0x4b9   : > { %v2187_v24 = vpop.f32.mrf.mxu3 }
 0x4ba   : > { %v2188_v55 = vadd.f32 %v3709_v38, %v2187_v24  ;;  %v1467_v51 = vpop.f32.mrf.mxu2  ;;  %v751_v24 = vld [vmem:[#allocation2 + $0x648] sm:$0xff] }
 0x4bc   : > { %v2461_v63 = vmax.f32 %v2188_v55, 0.0  ;;  %v1054_v15 = vpop.f32.mrf.mxu1 }
 0x4bd   : > { %1101 = vmatmul.f32.gmra.mxu1 %v736_v42  ;;  %v1456_v22 = vadd.f32 %v1455_v16, %v1054_v15 }
 0x4be   : > { %2589 = vst [vmem:[%s3555_s15 + $0x1b8] sm:$0xff] %v2461_v63  ;;  %2866 = vmatmul.msk.f32.gmra.mxu3 %vm1620_vm2, %v1441_v41 }
 0x4bf   : > { %1517 = vmatmul.f32.gmra.mxu2 %v747_v27  ;;  %v760_v27 = vld [vmem:[#allocation2 + $0x690] sm:$0xff] }
 0x4c1   : > { %v2190_v10 = vpop.f32.mrf.mxu3 }
 0x4c2   : > { %v2191_v13 = vadd.f32 %v3709_v38, %v2190_v10  ;;  %v1470_v43 = vpop.f32.mrf.mxu2  ;;  %v753_v10 = vld [vmem:[#allocation2 + $0x658] sm:$0xff] }
 0x4c4   : > { %v2462_v48 = vmax.f32 %v2191_v13, 0.0  ;;  %v1057_v54 = vpop.f32.mrf.mxu1 }
 0x4c5   : > { %1104 = vmatmul.f32.gmra.mxu1 %v738_v44  ;;  %v1459_v37 = vadd.f32 %v1458_v3, %v1057_v54 }
 0x4c6   : > { %2590 = vst [vmem:[%s3555_s15 + $0x1c0] sm:$0xff] %v2462_v48  ;;  %2867 = vmatmul.msk.f32.gmra.mxu3 %vm1620_vm2, %v1444_v57 }
 0x4c7   : > { %1520 = vmatmul.f32.gmra.mxu2 %v749_v53  ;;  %v762_v53 = vld [vmem:[#allocation2 + $0x6a0] sm:$0xff] }
 0x4c9   : > { %v2193_v7 = vpop.f32.mrf.mxu3 }
 0x4ca   : > { %v2194_v18 = vadd.f32 %v3709_v38, %v2193_v7  ;;  %v1473_v56 = vpop.f32.mrf.mxu2  ;;  %v755_v7 = vld [vmem:[#allocation2 + $0x668] sm:$0xff] }
 0x4cc   : > { %v2463_v60 = vmax.f32 %v2194_v18, 0.0  ;;  %v1060_v62 = vpop.f32.mrf.mxu1 }
 0x4cd   : > { %1107 = vmatmul.f32.gmra.mxu1 %v740_v2  ;;  %v1462_v50 = vadd.f32 %v1461_v61, %v1060_v62 }
 0x4ce   : > { %2591 = vst [vmem:[%s3555_s15 + $0x1c8] sm:$0xff] %v2463_v60  ;;  %2868 = vmatmul.msk.f32.gmra.mxu3 %vm1620_vm2, %v1447_v20 }
 0x4cf   : > { %1523 = vmatmul.f32.gmra.mxu2 %v751_v24  ;;  %v764_v24 = vld [vmem:[#allocation2 + $0x6b0] sm:$0xff] }
 0x4d1   : > { %v2196_v23 = vpop.f32.mrf.mxu3 }
 0x4d2   : > { %v2197_v12 = vadd.f32 %v3709_v38, %v2196_v23  ;;  %v1476_v6 = vpop.f32.mrf.mxu2  ;;  %v757_v23 = vld [vmem:[#allocation2 + $0x678] sm:$0xff] }
 0x4d4   : > { %v2464_v47 = vmax.f32 %v2197_v12, 0.0  ;;  %v1063_v14 = vpop.f32.mrf.mxu1 }
 0x4d5   : > { %1110 = vmatmul.f32.gmra.mxu1 %v742_v0  ;;  %v1465_v63 = vadd.f32 %v1464_v58, %v1063_v14 }
 0x4d6   : > { %2592 = vst [vmem:[%s3555_s15 + $0x1d0] sm:$0xff] %v2464_v47  ;;  %2869 = vmatmul.msk.f32.gmra.mxu3 %vm1620_vm2, %v1450_v46 }
 0x4d7   : > { %1526 = vmatmul.f32.gmra.mxu2 %v753_v10  ;;  %v766_v10 = vld [vmem:[#allocation2 + $0x6c0] sm:$0xff] }
 0x4d9   : > { %v2199_v49 = vpop.f32.mrf.mxu3 }
 0x4da   : > { %v2200_v19 = vadd.f32 %v3709_v38, %v2199_v49  ;;  %v1479_v42 = vpop.f32.mrf.mxu2  ;;  %v759_v49 = vld [vmem:[#allocation2 + $0x688] sm:$0xff] }
 0x4dc   : > { %v2465_v25 = vmax.f32 %v2200_v19, 0.0  ;;  %v1066_v28 = vpop.f32.mrf.mxu1 }
 0x4dd   : > { %1113 = vmatmul.f32.gmra.mxu1 %v744_v31  ;;  %v1468_v48 = vadd.f32 %v1467_v51, %v1066_v28 }
 0x4de   : > { %2593 = vst [vmem:[%s3555_s15 + $0x1d8] sm:$0xff] %v2465_v25  ;;  %2870 = vmatmul.msk.f32.gmra.mxu3 %vm1620_vm2, %v1453_v5 }
 0x4df   : > { %1529 = vmatmul.f32.gmra.mxu2 %v755_v7  ;;  %v768_v7 = vld [vmem:[#allocation2 + $0x6d0] sm:$0xff] }
 0x4e1   : > { %v2202_v17 = vpop.f32.mrf.mxu3 }
 0x4e2   : > { %v2203_v26 = vadd.f32 %v3709_v38, %v2202_v17  ;;  %v1482_v44 = vpop.f32.mrf.mxu2  ;;  %v761_v17 = vld [vmem:[#allocation2 + $0x698] sm:$0xff] }
 0x4e4   : > { %v2466_v29 = vmax.f32 %v2203_v26, 0.0  ;;  %v1069_v32 = vpop.f32.mrf.mxu1 }
 0x4e5   : > { %1116 = vmatmul.f32.gmra.mxu1 %v746_v45  ;;  %v1471_v60 = vadd.f32 %v1470_v43, %v1069_v32 }
 0x4e6   : > { %2594 = vst [vmem:[%s3555_s15 + $0x1e0] sm:$0xff] %v2466_v29  ;;  %2871 = vmatmul.msk.f32.gmra.mxu3 %vm1620_vm2, %v1456_v22 }
 0x4e7   : > { %1532 = vmatmul.f32.gmra.mxu2 %v757_v23  ;;  %v770_v23 = vld [vmem:[#allocation2 + $0x6e0] sm:$0xff] }
 0x4e9   : > { %v2205_v33 = vpop.f32.mrf.mxu3 }
 0x4ea   : > { %v2206_v30 = vadd.f32 %v3709_v38, %v2205_v33  ;;  %v1485_v2 = vpop.f32.mrf.mxu2  ;;  %v763_v33 = vld [vmem:[#allocation2 + $0x6a8] sm:$0xff] }
 0x4ec   : > { %v2467_v39 = vmax.f32 %v2206_v30, 0.0  ;;  %v1072_v36 = vpop.f32.mrf.mxu1 }
 0x4ed   : > { %1119 = vmatmul.f32.gmra.mxu1 %v748_v59  ;;  %v1474_v47 = vadd.f32 %v1473_v56, %v1072_v36 }
 0x4ee   : > { %2595 = vst [vmem:[%s3555_s15 + $0x1e8] sm:$0xff] %v2467_v39  ;;  %2872 = vmatmul.msk.f32.gmra.mxu3 %vm1620_vm2, %v1459_v37 }
 0x4ef   : > { %1535 = vmatmul.f32.gmra.mxu2 %v759_v49  ;;  %v772_v49 = vld [vmem:[#allocation2 + $0x6f0] sm:$0xff] }
 0x4f1   : > { %v2208_v35 = vpop.f32.mrf.mxu3 }
 0x4f2   : > { %v2209_v34 = vadd.f32 %v3709_v38, %v2208_v35  ;;  %v1488_v0 = vpop.f32.mrf.mxu2  ;;  %v765_v35 = vld [vmem:[#allocation2 + $0x6b8] sm:$0xff] }
 0x4f4   : > { %v2468_v52 = vmax.f32 %v2209_v34, 0.0  ;;  %v1075_v4 = vpop.f32.mrf.mxu1 }
 0x4f5   : > { %1122 = vmatmul.f32.gmra.mxu1 %v750_v8  ;;  %v1477_v25 = vadd.f32 %v1476_v6, %v1075_v4 }
 0x4f6   : > { %2596 = vst [vmem:[%s3555_s15 + $0x1f0] sm:$0xff] %v2468_v52  ;;  %2873 = vmatmul.msk.f32.gmra.mxu3 %vm1620_vm2, %v1462_v50 }
 0x4f7   : > { %1538 = vmatmul.f32.gmra.mxu2 %v761_v17  ;;  %v774_v17 = vld [vmem:[#allocation2 + $0x700] sm:$0xff] }
 0x4f9   : > { %v2211_v55 = vpop.f32.mrf.mxu3 }
 0x4fa   : > { %v2212_v41 = vadd.f32 %v3709_v38, %v2211_v55  ;;  %v1491_v31 = vpop.f32.mrf.mxu2  ;;  %v767_v55 = vld [vmem:[#allocation2 + $0x6c8] sm:$0xff] }
 0x4fc   : > { %v2469_v1 = vmax.f32 %v2212_v41, 0.0  ;;  %v1078_v16 = vpop.f32.mrf.mxu1 }
 0x4fd   : > { %1125 = vmatmul.f32.gmra.mxu1 %v752_v21  ;;  %v1480_v29 = vadd.f32 %v1479_v42, %v1078_v16 }
 0x4fe   : > { %2597 = vst [vmem:[%s3555_s15 + $0x1f8] sm:$0xff] %v2469_v1  ;;  %2874 = vmatmul.msk.f32.gmra.mxu3 %vm1620_vm2, %v1465_v63 }
 0x4ff   : > { %1541 = vmatmul.f32.gmra.mxu2 %v763_v33  ;;  %v776_v33 = vld [vmem:[#allocation2 + $0x710] sm:$0xff] }
 0x501   : > { %v2214_v13 = vpop.f32.mrf.mxu3 }
 0x502   : > { %v2215_v57 = vadd.f32 %v3709_v38, %v2214_v13  ;;  %v1494_v45 = vpop.f32.mrf.mxu2  ;;  %v769_v13 = vld [vmem:[#allocation2 + $0x6d8] sm:$0xff] }
 0x504   : > { %v2470_v15 = vmax.f32 %v2215_v57, 0.0  ;;  %v1081_v3 = vpop.f32.mrf.mxu1 }
 0x505   : > { %1128 = vmatmul.f32.gmra.mxu1 %v754_v9  ;;  %v1483_v39 = vadd.f32 %v1482_v44, %v1081_v3 }
 0x506   : > { %2598 = vst [vmem:[%s3555_s15 + $0x200] sm:$0xff] %v2470_v15  ;;  %2875 = vmatmul.msk.f32.gmra.mxu3 %vm1620_vm2, %v1468_v48 }
 0x507   : > { %1544 = vmatmul.f32.gmra.mxu2 %v765_v35  ;;  %v778_v35 = vld [vmem:[#allocation2 + $0x720] sm:$0xff] }
 0x509   : > { %v2217_v18 = vpop.f32.mrf.mxu3 }
 0x50a   : > { %v2218_v20 = vadd.f32 %v3709_v38, %v2217_v18  ;;  %v1497_v59 = vpop.f32.mrf.mxu2  ;;  %v771_v18 = vld [vmem:[#allocation2 + $0x6e8] sm:$0xff] }
 0x50c   : > { %v2471_v54 = vmax.f32 %v2218_v20, 0.0  ;;  %v1084_v61 = vpop.f32.mrf.mxu1 }
 0x50d   : > { %1131 = vmatmul.f32.gmra.mxu1 %v756_v11  ;;  %v1486_v52 = vadd.f32 %v1485_v2, %v1084_v61 }
 0x50e   : > { %2599 = vst [vmem:[%s3555_s15 + $0x208] sm:$0xff] %v2471_v54  ;;  %2876 = vmatmul.msk.f32.gmra.mxu3 %vm1620_vm2, %v1471_v60 }
 0x50f   : > { %1547 = vmatmul.f32.gmra.mxu2 %v767_v55  ;;  %v780_v55 = vld [vmem:[#allocation2 + $0x730] sm:$0xff] }
 0x511   : > { %v2220_v12 = vpop.f32.mrf.mxu3 }
 0x512   : > { %v2221_v46 = vadd.f32 %v3709_v38, %v2220_v12  ;;  %v1500_v8 = vpop.f32.mrf.mxu2  ;;  %v773_v12 = vld [vmem:[#allocation2 + $0x6f8] sm:$0xff] }
 0x514   : > { %v2472_v62 = vmax.f32 %v2221_v46, 0.0  ;;  %v1087_v58 = vpop.f32.mrf.mxu1 }
 0x515   : > { %1134 = vmatmul.f32.gmra.mxu1 %v758_v40  ;;  %v1489_v1 = vadd.f32 %v1488_v0, %v1087_v58 }
 0x516   : > { %2600 = vst [vmem:[%s3555_s15 + $0x210] sm:$0xff] %v2472_v62  ;;  %2877 = vmatmul.msk.f32.gmra.mxu3 %vm1620_vm2, %v1474_v47 }
 0x517   : > { %1550 = vmatmul.f32.gmra.mxu2 %v769_v13  ;;  %v782_v13 = vld [vmem:[#allocation2 + $0x740] sm:$0xff] }
 0x519   : > { %v2223_v19 = vpop.f32.mrf.mxu3 }
 0x51a   : > { %v2224_v5 = vadd.f32 %v3709_v38, %v2223_v19  ;;  %v1503_v21 = vpop.f32.mrf.mxu2  ;;  %v775_v19 = vld [vmem:[#allocation2 + $0x708] sm:$0xff] }
 0x51c   : > { %v2473_v14 = vmax.f32 %v2224_v5, 0.0  ;;  %v1090_v51 = vpop.f32.mrf.mxu1 }
 0x51d   : > { %1137 = vmatmul.f32.gmra.mxu1 %v760_v27  ;;  %v1492_v15 = vadd.f32 %v1491_v31, %v1090_v51 }
 0x51e   : > { %2601 = vst [vmem:[%s3555_s15 + $0x218] sm:$0xff] %v2473_v14  ;;  %2878 = vmatmul.msk.f32.gmra.mxu3 %vm1620_vm2, %v1477_v25 }
 0x51f   : > { %1553 = vmatmul.f32.gmra.mxu2 %v771_v18  ;;  %v784_v18 = vld [vmem:[#allocation2 + $0x750] sm:$0xff] }
 0x521   : > { %v2226_v26 = vpop.f32.mrf.mxu3 }
 0x522   : > { %v2227_v22 = vadd.f32 %v3709_v38, %v2226_v26  ;;  %v1506_v9 = vpop.f32.mrf.mxu2  ;;  %v777_v26 = vld [vmem:[#allocation2 + $0x718] sm:$0xff] }
 0x524   : > { %v2474_v28 = vmax.f32 %v2227_v22, 0.0  ;;  %v1093_v43 = vpop.f32.mrf.mxu1 }
 0x525   : > { %1140 = vmatmul.f32.gmra.mxu1 %v762_v53  ;;  %v1495_v54 = vadd.f32 %v1494_v45, %v1093_v43 }
 0x526   : > { %2602 = vst [vmem:[%s3555_s15 + $0x220] sm:$0xff] %v2474_v28  ;;  %2879 = vmatmul.msk.f32.gmra.mxu3 %vm1620_vm2, %v1480_v29 }
 0x527   : > { %1556 = vmatmul.f32.gmra.mxu2 %v773_v12  ;;  %v786_v12 = vld [vmem:[#allocation2 + $0x760] sm:$0xff] }
 0x529   : > { %v2229_v30 = vpop.f32.mrf.mxu3 }
 0x52a   : > { %v2230_v37 = vadd.f32 %v3709_v38, %v2229_v30  ;;  %v1509_v11 = vpop.f32.mrf.mxu2  ;;  %v779_v30 = vld [vmem:[#allocation2 + $0x728] sm:$0xff] }
 0x52c   : > { %v2475_v32 = vmax.f32 %v2230_v37, 0.0  ;;  %v1096_v56 = vpop.f32.mrf.mxu1 }
 0x52d   : > { %1143 = vmatmul.f32.gmra.mxu1 %v764_v24  ;;  %v1498_v62 = vadd.f32 %v1497_v59, %v1096_v56 }
 0x52e   : > { %2603 = vst [vmem:[%s3555_s15 + $0x228] sm:$0xff] %v2475_v32  ;;  %2880 = vmatmul.msk.f32.gmra.mxu3 %vm1620_vm2, %v1483_v39 }
 0x52f   : > { %1559 = vmatmul.f32.gmra.mxu2 %v775_v19  ;;  %v788_v19 = vld [vmem:[#allocation2 + $0x770] sm:$0xff] }
 0x531   : > { %v2232_v34 = vpop.f32.mrf.mxu3 }
 0x532   : > { %v2233_v50 = vadd.f32 %v3709_v38, %v2232_v34  ;;  %v1512_v40 = vpop.f32.mrf.mxu2  ;;  %v781_v34 = vld [vmem:[#allocation2 + $0x738] sm:$0xff] }
 0x534   : > { %v2476_v36 = vmax.f32 %v2233_v50, 0.0  ;;  %v1099_v6 = vpop.f32.mrf.mxu1 }
 0x535   : > { %1146 = vmatmul.f32.gmra.mxu1 %v766_v10  ;;  %v1501_v14 = vadd.f32 %v1500_v8, %v1099_v6 }
 0x536   : > { %2604 = vst [vmem:[%s3555_s15 + $0x230] sm:$0xff] %v2476_v36  ;;  %2881 = vmatmul.msk.f32.gmra.mxu3 %vm1620_vm2, %v1486_v52 }
 0x537   : > { %1562 = vmatmul.f32.gmra.mxu2 %v777_v26  ;;  %v790_v26 = vld [vmem:[#allocation2 + $0x780] sm:$0xff] }
 0x539   : > { %v2235_v41 = vpop.f32.mrf.mxu3 }
 0x53a   : > { %v2236_v63 = vadd.f32 %v3709_v38, %v2235_v41  ;;  %v1515_v27 = vpop.f32.mrf.mxu2  ;;  %v783_v41 = vld [vmem:[#allocation2 + $0x748] sm:$0xff] }
 0x53c   : > { %v2477_v4 = vmax.f32 %v2236_v63, 0.0  ;;  %v1102_v42 = vpop.f32.mrf.mxu1 }
 0x53d   : > { %1149 = vmatmul.f32.gmra.mxu1 %v768_v7  ;;  %v1504_v28 = vadd.f32 %v1503_v21, %v1102_v42 }
 0x53e   : > { %2605 = vst [vmem:[%s3555_s15 + $0x238] sm:$0xff] %v2477_v4  ;;  %2882 = vmatmul.msk.f32.gmra.mxu3 %vm1620_vm2, %v1489_v1 }
 0x53f   : > { %1565 = vmatmul.f32.gmra.mxu2 %v779_v30  ;;  %v792_v30 = vld [vmem:[#allocation2 + $0x790] sm:$0xff] }
 0x541   : > { %v2238_v57 = vpop.f32.mrf.mxu3 }
 0x542   : > { %v2239_v48 = vadd.f32 %v3709_v38, %v2238_v57  ;;  %v1518_v53 = vpop.f32.mrf.mxu2  ;;  %v785_v57 = vld [vmem:[#allocation2 + $0x758] sm:$0xff] }
 0x544   : > { %v2478_v16 = vmax.f32 %v2239_v48, 0.0  ;;  %v1105_v44 = vpop.f32.mrf.mxu1 }
 0x545   : > { %1152 = vmatmul.f32.gmra.mxu1 %v770_v23  ;;  %v1507_v32 = vadd.f32 %v1506_v9, %v1105_v44 }
 0x546   : > { %2606 = vst [vmem:[%s3555_s15 + $0x240] sm:$0xff] %v2478_v16  ;;  %2883 = vmatmul.msk.f32.gmra.mxu3 %vm1620_vm2, %v1492_v15 }
 0x547   : > { %1568 = vmatmul.f32.gmra.mxu2 %v781_v34  ;;  %v794_v34 = vld [vmem:[#allocation2 + $0x7a0] sm:$0xff] }
 0x549   : > { %v2241_v20 = vpop.f32.mrf.mxu3 }
 0x54a   : > { %v2242_v60 = vadd.f32 %v3709_v38, %v2241_v20  ;;  %v1521_v24 = vpop.f32.mrf.mxu2  ;;  %v787_v20 = vld [vmem:[#allocation2 + $0x768] sm:$0xff] }
 0x54c   : > { %v2479_v3 = vmax.f32 %v2242_v60, 0.0  ;;  %v1108_v2 = vpop.f32.mrf.mxu1 }
 0x54d   : > { %1155 = vmatmul.f32.gmra.mxu1 %v772_v49  ;;  %v1510_v36 = vadd.f32 %v1509_v11, %v1108_v2 }
 0x54e   : > { %2607 = vst [vmem:[%s3555_s15 + $0x248] sm:$0xff] %v2479_v3  ;;  %2884 = vmatmul.msk.f32.gmra.mxu3 %vm1620_vm2, %v1495_v54 }
 0x54f   : > { %1571 = vmatmul.f32.gmra.mxu2 %v783_v41  ;;  %v796_v41 = vld [vmem:[#allocation2 + $0x7b0] sm:$0xff] }
 0x551   : > { %v2244_v46 = vpop.f32.mrf.mxu3 }
 0x552   : > { %v2245_v47 = vadd.f32 %v3709_v38, %v2244_v46  ;;  %v1524_v10 = vpop.f32.mrf.mxu2  ;;  %v789_v46 = vld [vmem:[#allocation2 + $0x778] sm:$0xff] }
 0x554   : > { %v2480_v61 = vmax.f32 %v2245_v47, 0.0  ;;  %v1111_v0 = vpop.f32.mrf.mxu1 }
 0x555   : > { %1158 = vmatmul.f32.gmra.mxu1 %v774_v17  ;;  %v1513_v4 = vadd.f32 %v1512_v40, %v1111_v0 }
 0x556   : > { %2608 = vst [vmem:[%s3555_s15 + $0x250] sm:$0xff] %v2480_v61  ;;  %2885 = vmatmul.msk.f32.gmra.mxu3 %vm1620_vm2, %v1498_v62 }
 0x557   : > { %1574 = vmatmul.f32.gmra.mxu2 %v785_v57  ;;  %v798_v57 = vld [vmem:[#allocation2 + $0x7c0] sm:$0xff] }
 0x559   : > { %v2247_v5 = vpop.f32.mrf.mxu3 }
 0x55a   : > { %v2248_v25 = vadd.f32 %v3709_v38, %v2247_v5  ;;  %v1527_v7 = vpop.f32.mrf.mxu2  ;;  %v791_v5 = vld [vmem:[#allocation2 + $0x788] sm:$0xff] }
 0x55c   : > { %v2481_v58 = vmax.f32 %v2248_v25, 0.0  ;;  %v1114_v31 = vpop.f32.mrf.mxu1 }
 0x55d   : > { %1161 = vmatmul.f32.gmra.mxu1 %v776_v33  ;;  %v1516_v16 = vadd.f32 %v1515_v27, %v1114_v31 }
 0x55e   : > { %2609 = vst [vmem:[%s3555_s15 + $0x258] sm:$0xff] %v2481_v58  ;;  %2886 = vmatmul.msk.f32.gmra.mxu3 %vm1620_vm2, %v1501_v14 }
 0x55f   : > { %1577 = vmatmul.f32.gmra.mxu2 %v787_v20  ;;  %v800_v20 = vld [vmem:[#allocation2 + $0x7d0] sm:$0xff] }
 0x561   : > { %v2250_v22 = vpop.f32.mrf.mxu3 }
 0x562   : > { %v2251_v29 = vadd.f32 %v3709_v38, %v2250_v22  ;;  %v1530_v23 = vpop.f32.mrf.mxu2  ;;  %v793_v22 = vld [vmem:[#allocation2 + $0x798] sm:$0xff] }
 0x564   : > { %v2482_v51 = vmax.f32 %v2251_v29, 0.0  ;;  %v1117_v45 = vpop.f32.mrf.mxu1 }
 0x565   : > { %1164 = vmatmul.f32.gmra.mxu1 %v778_v35  ;;  %v1519_v3 = vadd.f32 %v1518_v53, %v1117_v45 }
 0x566   : > { %2610 = vst [vmem:[%s3555_s15 + $0x260] sm:$0xff] %v2482_v51  ;;  %2887 = vmatmul.msk.f32.gmra.mxu3 %vm1620_vm2, %v1504_v28 }
 0x567   : > { %1580 = vmatmul.f32.gmra.mxu2 %v789_v46  ;;  %v802_v46 = vld [vmem:[#allocation2 + $0x7e0] sm:$0xff] }
 0x569   : > { %v2253_v37 = vpop.f32.mrf.mxu3 }
 0x56a   : > { %v2254_v39 = vadd.f32 %v3709_v38, %v2253_v37  ;;  %v1533_v49 = vpop.f32.mrf.mxu2  ;;  %v795_v37 = vld [vmem:[#allocation2 + $0x7a8] sm:$0xff] }
 0x56c   : > { %v2483_v43 = vmax.f32 %v2254_v39, 0.0  ;;  %v1120_v59 = vpop.f32.mrf.mxu1 }
 0x56d   : > { %1167 = vmatmul.f32.gmra.mxu1 %v780_v55  ;;  %v1522_v61 = vadd.f32 %v1521_v24, %v1120_v59 }
 0x56e   : > { %2611 = vst [vmem:[%s3555_s15 + $0x268] sm:$0xff] %v2483_v43  ;;  %2888 = vmatmul.msk.f32.gmra.mxu3 %vm1620_vm2, %v1507_v32 }
 0x56f   : > { %1583 = vmatmul.f32.gmra.mxu2 %v791_v5  ;;  %v804_v5 = vld [vmem:[#allocation2 + $0x7f0] sm:$0xff] }
 0x571   : > { %v2256_v50 = vpop.f32.mrf.mxu3 }
 0x572   : > { %v2257_v52 = vadd.f32 %v3709_v38, %v2256_v50  ;;  %v1536_v17 = vpop.f32.mrf.mxu2  ;;  %v797_v50 = vld [vmem:[#allocation2 + $0x7b8] sm:$0xff] }
 0x574   : > { %v2484_v56 = vmax.f32 %v2257_v52, 0.0  ;;  %v1123_v8 = vpop.f32.mrf.mxu1 }
 0x575   : > { %1170 = vmatmul.f32.gmra.mxu1 %v782_v13  ;;  %v1525_v58 = vadd.f32 %v1524_v10, %v1123_v8 }
 0x576   : > { %2612 = vst [vmem:[%s3555_s15 + $0x270] sm:$0xff] %v2484_v56  ;;  %2889 = vmatmul.msk.f32.gmra.mxu3 %vm1620_vm2, %v1510_v36 }
 0x577   : > { %1586 = vmatmul.f32.gmra.mxu2 %v793_v22 }
 0x579   : > { %v2259_v63 = vpop.f32.mrf.mxu3 }
 0x57a   : > { %v2260_v1 = vadd.f32 %v3709_v38, %v2259_v63  ;;  %v1539_v33 = vpop.f32.mrf.mxu2  ;;  %v799_v63 = vld [vmem:[#allocation2 + $0x7c8] sm:$0xff] }
 0x57c   : > { %v2485_v6 = vmax.f32 %v2260_v1, 0.0  ;;  %v1126_v21 = vpop.f32.mrf.mxu1 }
 0x57d   : > { %1173 = vmatmul.f32.gmra.mxu1 %v784_v18  ;;  %v1528_v51 = vadd.f32 %v1527_v7, %v1126_v21 }
 0x57e   : > { %2613 = vst [vmem:[%s3555_s15 + $0x278] sm:$0xff] %v2485_v6  ;;  %2890 = vmatmul.msk.f32.gmra.mxu3 %vm1620_vm2, %v1513_v4 }
 0x57f   : > { %1589 = vmatmul.f32.gmra.mxu2 %v795_v37 }
 0x581   : > { %v2262_v48 = vpop.f32.mrf.mxu3 }
 0x582   : > { %v2263_v15 = vadd.f32 %v3709_v38, %v2262_v48  ;;  %v1542_v35 = vpop.f32.mrf.mxu2  ;;  %v801_v48 = vld [vmem:[#allocation2 + $0x7d8] sm:$0xff] }
 0x584   : > { %v2486_v42 = vmax.f32 %v2263_v15, 0.0  ;;  %v1129_v9 = vpop.f32.mrf.mxu1 }
 0x585   : > { %1176 = vmatmul.f32.gmra.mxu1 %v786_v12  ;;  %v1531_v43 = vadd.f32 %v1530_v23, %v1129_v9 }
 0x586   : > { %2614 = vst [vmem:[%s3555_s15 + $0x280] sm:$0xff] %v2486_v42  ;;  %2891 = vmatmul.msk.f32.gmra.mxu3 %vm1620_vm2, %v1516_v16 }
 0x587   : > { %1592 = vmatmul.f32.gmra.mxu2 %v797_v50 }
 0x589   : > { %v2265_v60 = vpop.f32.mrf.mxu3 }
 0x58a   : > { %v2266_v54 = vadd.f32 %v3709_v38, %v2265_v60  ;;  %v1545_v55 = vpop.f32.mrf.mxu2  ;;  %v803_v60 = vld [vmem:[#allocation2 + $0x7e8] sm:$0xff] }
 0x58c   : > { %v2487_v44 = vmax.f32 %v2266_v54, 0.0  ;;  %v1132_v11 = vpop.f32.mrf.mxu1 }
 0x58d   : > { %1179 = vmatmul.f32.gmra.mxu1 %v788_v19  ;;  %v1534_v56 = vadd.f32 %v1533_v49, %v1132_v11 }
 0x58e   : > { %2615 = vst [vmem:[%s3555_s15 + $0x288] sm:$0xff] %v2487_v44  ;;  %2892 = vmatmul.msk.f32.gmra.mxu3 %vm1620_vm2, %v1519_v3 }
 0x58f   : > { %1595 = vmatmul.f32.gmra.mxu2 %v799_v63 }
 0x591   : > { %v2268_v47 = vpop.f32.mrf.mxu3 }
 0x592   : > { %v2269_v62 = vadd.f32 %v3709_v38, %v2268_v47  ;;  %v1548_v13 = vpop.f32.mrf.mxu2  ;;  %v805_v47 = vld [vmem:[#allocation2 + $0x7f8] sm:$0xff] }
 0x594   : > { %v2488_v2 = vmax.f32 %v2269_v62, 0.0  ;;  %v1135_v40 = vpop.f32.mrf.mxu1 }
 0x595   : > { %1182 = vmatmul.f32.gmra.mxu1 %v790_v26  ;;  %v1537_v6 = vadd.f32 %v1536_v17, %v1135_v40 }
 0x596   : > { %2616 = vst [vmem:[%s3555_s15 + $0x290] sm:$0xff] %v2488_v2  ;;  %2893 = vmatmul.msk.f32.gmra.mxu3 %vm1620_vm2, %v1522_v61  ;;  %v3843_v61 = vld [vmem:[%s3981_s5] ss:$0 sm:$0xff] }
 0x597   : > { %1598 = vmatmul.f32.gmra.mxu2 %v801_v48 }
 0x599   : > { %v2271_v25 = vpop.f32.mrf.mxu3 }
 0x59a   : > { %v2272_v14 = vadd.f32 %v3709_v38, %v2271_v25  ;;  %v1551_v18 = vpop.f32.mrf.mxu2 }
 0x59c   : > { %v2489_v0 = vmax.f32 %v2272_v14, 0.0  ;;  %v1138_v27 = vpop.f32.mrf.mxu1 }
 0x59d   : > { %1185 = vmatmul.f32.gmra.mxu1 %v792_v30  ;;  %v1540_v42 = vadd.f32 %v1539_v33, %v1138_v27 }
 0x59e   : > { %2617 = vst [vmem:[%s3555_s15 + $0x298] sm:$0xff] %v2489_v0  ;;  %2894 = vmatmul.msk.f32.gmra.mxu3 %vm1620_vm2, %v1525_v58 }
 0x59f   : > { %1601 = vmatmul.f32.gmra.mxu2 %v803_v60 }
 0x5a1   : > { %v2274_v29 = vpop.f32.mrf.mxu3 }
 0x5a2   : > { %v2275_v28 = vadd.f32 %v3709_v38, %v2274_v29  ;;  %v1554_v12 = vpop.f32.mrf.mxu2 }
 0x5a4   : > { %v2490_v31 = vmax.f32 %v2275_v28, 0.0  ;;  %v1141_v53 = vpop.f32.mrf.mxu1 }
 0x5a5   : > { %1188 = vmatmul.f32.gmra.mxu1 %v794_v34  ;;  %v1543_v44 = vadd.f32 %v1542_v35, %v1141_v53 }
 0x5a6   : > { %2618 = vst [vmem:[%s3555_s15 + $0x2a0] sm:$0xff] %v2490_v31  ;;  %2895 = vmatmul.msk.f32.gmra.mxu3 %vm1620_vm2, %v1528_v51 }
 0x5a7   : > { %1604 = vmatmul.f32.gmra.mxu2 %v805_v47 }
 0x5a9   : > { %v2277_v39 = vpop.f32.mrf.mxu3 }
 0x5aa   : > { %v2278_v32 = vadd.f32 %v3709_v38, %v2277_v39  ;;  %v1557_v19 = vpop.f32.mrf.mxu2 }
 0x5ac   : > { %v2491_v45 = vmax.f32 %v2278_v32, 0.0  ;;  %v1144_v24 = vpop.f32.mrf.mxu1 }
 0x5ad   : > { %1191 = vmatmul.f32.gmra.mxu1 %v796_v41  ;;  %v1546_v2 = vadd.f32 %v1545_v55, %v1144_v24 }
 0x5ae   : > { %2619 = vst [vmem:[%s3555_s15 + $0x2a8] sm:$0xff] %v2491_v45  ;;  %2896 = vmatmul.msk.f32.gmra.mxu3 %vm1620_vm2, %v1531_v43 }
 0x5b1   : > { %v2280_v52 = vpop.f32.mrf.mxu3 }
 0x5b2   : > { %v2281_v36 = vadd.f32 %v3709_v38, %v2280_v52  ;;  %v1560_v17 = vpop.f32.mrf.mxu2 }
 0x5b4   : > { %v2492_v59 = vmax.f32 %v2281_v36, 0.0  ;;  %v1147_v10 = vpop.f32.mrf.mxu1 }
 0x5b5   : > { %1194 = vmatmul.f32.gmra.mxu1 %v798_v57  ;;  %v1549_v58 = vadd.f32 %v1548_v13, %v1147_v10 }
 0x5b6   : > { %2620 = vst [vmem:[%s3555_s15 + $0x2b0] sm:$0xff] %v2492_v59  ;;  %2897 = vmatmul.msk.f32.gmra.mxu3 %vm1620_vm2, %v1534_v56 }
 0x5b9   : > { %v2283_v1 = vpop.f32.mrf.mxu3 }
 0x5ba   : > { %v2284_v4 = vadd.f32 %v3709_v38, %v2283_v1  ;;  %v1563_v31 = vpop.f32.mrf.mxu2 }
 0x5bc   : > { %v2493_v8 = vmax.f32 %v2284_v4, 0.0  ;;  %v1150_v7 = vpop.f32.mrf.mxu1 }
 0x5bd   : > { %1197 = vmatmul.f32.gmra.mxu1 %v800_v20  ;;  %v1552_v29 = vadd.f32 %v1551_v18, %v1150_v7 }
 0x5be   : > { %2621 = vst [vmem:[%s3555_s15 + $0x2b8] sm:$0xff] %v2493_v8  ;;  %2898 = vmatmul.msk.f32.gmra.mxu3 %vm1620_vm2, %v1537_v6 }
 0x5c1   : > { %v2286_v15 = vpop.f32.mrf.mxu3 }
 0x5c2   : > { %v2287_v16 = vadd.f32 %v3709_v38, %v2286_v15  ;;  %v1566_v32 = vpop.f32.mrf.mxu2 }
 0x5c4   : > { %v2494_v21 = vmax.f32 %v2287_v16, 0.0  ;;  %v1153_v23 = vpop.f32.mrf.mxu1 }
 0x5c5   : > { %1200 = vmatmul.f32.gmra.mxu1 %v802_v46  ;;  %v1555_v30 = vadd.f32 %v1554_v12, %v1153_v23 }
 0x5c6   : > { %2622 = vst [vmem:[%s3555_s15 + $0x2c0] sm:$0xff] %v2494_v21  ;;  %2899 = vmatmul.msk.f32.gmra.mxu3 %vm1620_vm2, %v1540_v42 }
 0x5c9   : > { %v2289_v54 = vpop.f32.mrf.mxu3 }
 0x5ca   : > { %v2290_v3 = vadd.f32 %v3709_v38, %v2289_v54  ;;  %v1569_v50 = vpop.f32.mrf.mxu2 }
 0x5cc   : > { %v2495_v9 = vmax.f32 %v2290_v3, 0.0  ;;  %v1156_v49 = vpop.f32.mrf.mxu1 }
 0x5cd   : > { %1203 = vmatmul.f32.gmra.mxu1 %v804_v5  ;;  %v1558_v53 = vadd.f32 %v1557_v19, %v1156_v49 }
 0x5ce   : > { %2623 = vst [vmem:[%s3555_s15 + $0x2c8] sm:$0xff] %v2495_v9  ;;  %2900 = vmatmul.msk.f32.gmra.mxu3 %vm1620_vm2, %v1543_v44 }
 0x5d1   : > { %v2292_v62 = vpop.f32.mrf.mxu3 }
 0x5d2   : > { %v2293_v38 = vadd.f32 %v3843_v61, %v2292_v62  ;;  %v1572_v41 = vpop.f32.mrf.mxu2 }
 0x5d4   : > { %v2496_v11 = vmax.f32 %v2293_v38, 0.0  ;;  %v1159_v40 = vpop.f32.mrf.mxu1 }
 0x5d5   : > { %v1561_v56 = vadd.f32 %v1560_v17, %v1159_v40 }
 0x5d6   : > { %2624 = vst [vmem:[%s3555_s15 + $0x2d0] sm:$0xff] %v2496_v11  ;;  %2901 = vmatmul.msk.f32.gmra.mxu3 %vm1620_vm2, %v1546_v2 }
 0x5d9   : > { %v2295_v25 = vpop.f32.mrf.mxu3 }
 0x5da   : > { %v2296_v14 = vadd.f32 %v3843_v61, %v2295_v25  ;;  %v1575_v57 = vpop.f32.mrf.mxu2 }
 0x5dc   : > { %v2497_v0 = vmax.f32 %v2296_v14, 0.0  ;;  %v1162_v51 = vpop.f32.mrf.mxu1 }
 0x5dd   : > { %v1564_v1 = vadd.f32 %v1563_v31, %v1162_v51 }
 0x5de   : > { %2625 = vst [vmem:[%s3555_s15 + $0x2d8] sm:$0xff] %v2497_v0  ;;  %2902 = vmatmul.msk.f32.gmra.mxu3 %vm1620_vm2, %v1549_v58 }
 0x5e1   : > { %v2298_v26 = vpop.f32.mrf.mxu3 }
 0x5e2   : > { %v2299_v22 = vadd.f32 %v3843_v61, %v2298_v26  ;;  %v1578_v18 = vpop.f32.mrf.mxu2 }
 0x5e4   : > { %v2498_v28 = vmax.f32 %v2299_v22, 0.0  ;;  %v1165_v39 = vpop.f32.mrf.mxu1 }
 0x5e5   : > { %v1567_v10 = vadd.f32 %v1566_v32, %v1165_v39 }
 0x5e6   : > { %2626 = vst [vmem:[%s3555_s15 + $0x2e0] sm:$0xff] %v2498_v28  ;;  %2903 = vmatmul.msk.f32.gmra.mxu3 %vm1620_vm2, %v1552_v29 }
 0x5e9   : > { %v2301_v27 = vpop.f32.mrf.mxu3 }
 0x5ea   : > { %v2302_v33 = vadd.f32 %v3843_v61, %v2301_v27  ;;  %v1581_v9 = vpop.f32.mrf.mxu2 }
 0x5ec   : > { %v2499_v37 = vmax.f32 %v2302_v33, 0.0  ;;  %v1168_v34 = vpop.f32.mrf.mxu1 }
 0x5ed   : > { %v1570_v42 = vadd.f32 %v1569_v50, %v1168_v34 }
 0x5ee   : > { %2627 = vst [vmem:[%s3555_s15 + $0x2e8] sm:$0xff] %v2499_v37  ;;  %2904 = vmatmul.msk.f32.gmra.mxu3 %vm1620_vm2, %v1555_v30 }
 0x5f1   : > { %v2304_v43 = vpop.f32.mrf.mxu3 }
 0x5f2   : > { %v2305_v45 = vadd.f32 %v3843_v61, %v2304_v43  ;;  %v1584_v2 = vpop.f32.mrf.mxu2 }
 0x5f4   : > { %v2500_v35 = vmax.f32 %v2305_v45, 0.0  ;;  %v1171_v24 = vpop.f32.mrf.mxu1 }
 0x5f5   : > { %v1573_v54 = vadd.f32 %v1572_v41, %v1171_v24 }
 0x5f6   : > { %2628 = vst [vmem:[%s3555_s15 + $0x2f0] sm:$0xff] %v2500_v35  ;;  %2905 = vmatmul.msk.f32.gmra.mxu3 %vm1620_vm2, %v1558_v53 }
 0x5f9   : > { %v2307_v52 = vpop.f32.mrf.mxu3 }
 0x5fa   : > { %v2308_v36 = vadd.f32 %v3843_v61, %v2307_v52  ;;  %v1587_v0 = vpop.f32.mrf.mxu2 }
 0x5fc   : > { %v2501_v59 = vmax.f32 %v2308_v36, 0.0  ;;  %v1174_v13 = vpop.f32.mrf.mxu1 }
 0x5fd   : > { %v1576_v46 = vadd.f32 %v1575_v57, %v1174_v13 }
 0x5fe   : > { %2629 = vst [vmem:[%s3555_s15 + $0x2f8] sm:$0xff] %v2501_v59  ;;  %2906 = vmatmul.msk.f32.gmra.mxu3 %vm1620_vm2, %v1561_v56 }
 0x601   : > { %v2310_v55 = vpop.f32.mrf.mxu3 }
 0x602   : > { %v2311_v63 = vadd.f32 %v3843_v61, %v2310_v55  ;;  %v1590_v51 = vpop.f32.mrf.mxu2 }
 0x604   : > { %v2502_v4 = vmax.f32 %v2311_v63, 0.0  ;;  %v1177_v7 = vpop.f32.mrf.mxu1 }
 0x605   : > { %v1579_v49 = vadd.f32 %v1578_v18, %v1177_v7 }
 0x606   : > { %2630 = vst [vmem:[%s3555_s15 + $0x300] sm:$0xff] %v2502_v4  ;;  %2907 = vmatmul.msk.f32.gmra.mxu3 %vm1620_vm2, %v1564_v1 }
 0x609   : > { %v2313_v6 = vpop.f32.mrf.mxu3 }
 0x60a   : > { %v2314_v8 = vadd.f32 %v3843_v61, %v2313_v6  ;;  %v1593_v39 = vpop.f32.mrf.mxu2 }
 0x60c   : > { %v2503_v48 = vmax.f32 %v2314_v8, 0.0  ;;  %v1180_v44 = vpop.f32.mrf.mxu1 }
 0x60d   : > { %v1582_v14 = vadd.f32 %v1581_v9, %v1180_v44 }
 0x60e   : > { %2631 = vst [vmem:[%s3555_s15 + $0x308] sm:$0xff] %v2503_v48  ;;  %2908 = vmatmul.msk.f32.gmra.mxu3 %vm1620_vm2, %v1567_v10 }
 0x611   : > { %v2316_v15 = vpop.f32.mrf.mxu3 }
 0x612   : > { %v2317_v16 = vadd.f32 %v3843_v61, %v2316_v15  ;;  %v1596_v50 = vpop.f32.mrf.mxu2 }
 0x614   : > { %v2504_v21 = vmax.f32 %v2317_v16, 0.0  ;;  %v1183_v62 = vpop.f32.mrf.mxu1 }
 0x615   : > { %v1585_v22 = vadd.f32 %v1584_v2, %v1183_v62 }
 0x616   : > { %2632 = vst [vmem:[%s3555_s15 + $0x310] sm:$0xff] %v2504_v21  ;;  %2909 = vmatmul.msk.f32.gmra.mxu3 %vm1620_vm2, %v1570_v42 }
 0x619   : > { %v2319_v20 = vpop.f32.mrf.mxu3 }
 0x61a   : > { %v2320_v60 = vadd.f32 %v3843_v61, %v2319_v20  ;;  %v1599_v63 = vpop.f32.mrf.mxu2 }
 0x61c   : > { %v2505_v3 = vmax.f32 %v2320_v60, 0.0  ;;  %v1186_v58 = vpop.f32.mrf.mxu1 }
 0x61d   : > { %v1588_v33 = vadd.f32 %v1587_v0, %v1186_v58 }
 0x61e   : > { %2633 = vst [vmem:[%s3555_s15 + $0x318] sm:$0xff] %v2505_v3  ;;  %2910 = vmatmul.msk.f32.gmra.mxu3 %vm1620_vm2, %v1573_v54 }
 0x621   : > { %v2322_v23 = vpop.f32.mrf.mxu3 }
 0x622   : > { %v2323_v12 = vadd.f32 %v3843_v61, %v2322_v23  ;;  %v1602_v57 = vpop.f32.mrf.mxu2 }
 0x624   : > { %v2506_v47 = vmax.f32 %v2323_v12, 0.0  ;;  %v1189_v28 = vpop.f32.mrf.mxu1 }
 0x625   : > { %v1591_v45 = vadd.f32 %v1590_v51, %v1189_v28 }
 0x626   : > { %2634 = vst [vmem:[%s3555_s15 + $0x320] sm:$0xff] %v2506_v47  ;;  %2911 = vmatmul.msk.f32.gmra.mxu3 %vm1620_vm2, %v1576_v46 }
 0x629   : > { %v2325_v38 = vpop.f32.mrf.mxu3 }
 0x62a   : > { %v2326_v11 = vadd.f32 %v3843_v61, %v2325_v38  ;;  %v1605_v7 = vpop.f32.mrf.mxu2 }
 0x62c   : > { %v2507_v19 = vmax.f32 %v2326_v11, 0.0  ;;  %v1192_v37 = vpop.f32.mrf.mxu1 }
 0x62d   : > { %v1594_v36 = vadd.f32 %v1593_v39, %v1192_v37 }
 0x62e   : > { %2635 = vst [vmem:[%s3555_s15 + $0x328] sm:$0xff] %v2507_v19  ;;  %2912 = vmatmul.msk.f32.gmra.mxu3 %vm1620_vm2, %v1579_v49 }
 0x631   : > { %v2328_v5 = vpop.f32.mrf.mxu3 }
 0x632   : > { %v2329_v25 = vadd.f32 %v3843_v61, %v2328_v5 }
 0x634   : > { %v2508_v40 = vmax.f32 %v2329_v25, 0.0  ;;  %v1195_v35 = vpop.f32.mrf.mxu1 }
 0x635   : > { %v1597_v55 = vadd.f32 %v1596_v50, %v1195_v35 }
 0x636   : > { %2636 = vst [vmem:[%s3555_s15 + $0x330] sm:$0xff] %v2508_v40  ;;  %2913 = vmatmul.msk.f32.gmra.mxu3 %vm1620_vm2, %v1582_v14 }
 0x639   : > { %v2331_v17 = vpop.f32.mrf.mxu3 }
 0x63a   : > { %v2332_v26 = vadd.f32 %v3843_v61, %v2331_v17 }
 0x63c   : > { %v2509_v29 = vmax.f32 %v2332_v26, 0.0  ;;  %v1198_v41 = vpop.f32.mrf.mxu1 }
 0x63d   : > { %v1600_v8 = vadd.f32 %v1599_v63, %v1198_v41 }
 0x63e   : > { %2637 = vst [vmem:[%s3555_s15 + $0x338] sm:$0xff] %v2509_v29  ;;  %2914 = vmatmul.msk.f32.gmra.mxu3 %vm1620_vm2, %v1585_v22 }
 0x641   : > { %v2334_v31 = vpop.f32.mrf.mxu3 }
 0x642   : > { %v2335_v27 = vadd.f32 %v3843_v61, %v2334_v31 }
 0x644   : > { %v2510_v30 = vmax.f32 %v2335_v27, 0.0  ;;  %v1201_v13 = vpop.f32.mrf.mxu1 }
 0x645   : > { %v1603_v16 = vadd.f32 %v1602_v57, %v1201_v13 }
 0x646   : > { %2638 = vst [vmem:[%s3555_s15 + $0x340] sm:$0xff] %v2510_v30  ;;  %2915 = vmatmul.msk.f32.gmra.mxu3 %vm1620_vm2, %v1588_v33 }
 0x649   : > { %v2337_v32 = vpop.f32.mrf.mxu3 }
 0x64a   : > { %v2338_v43 = vadd.f32 %v3843_v61, %v2337_v32 }
 0x64c   : > { %v2511_v53 = vmax.f32 %v2338_v43, 0.0  ;;  %v1204_v21 = vpop.f32.mrf.mxu1 }
 0x64d   : > { %v1606_v60 = vadd.f32 %v1605_v7, %v1204_v21 }
 0x64e   : > { %2639 = vst [vmem:[%s3555_s15 + $0x348] sm:$0xff] %v2511_v53  ;;  %2916 = vmatmul.msk.f32.gmra.mxu3 %vm1620_vm2, %v1591_v45 }
 0x651   : > { %v2340_v34 = vpop.f32.mrf.mxu3 }
 0x652   : > { %v2341_v52 = vadd.f32 %v3843_v61, %v2340_v34 }
 0x654   : > { %v2512_v56 = vmax.f32 %v2341_v52, 0.0 }
 0x656   : > { %2640 = vst [vmem:[%s3555_s15 + $0x350] sm:$0xff] %v2512_v56  ;;  %2917 = vmatmul.msk.f32.gmra.mxu3 %vm1620_vm2, %v1594_v36 }
 0x659   : > { %v2343_v59 = vpop.f32.mrf.mxu3 }
 0x65a   : > { %v2344_v24 = vadd.f32 %v3843_v61, %v2343_v59 }
 0x65c   : > { %v2513_v1 = vmax.f32 %v2344_v24, 0.0 }
 0x65e   : > { %2641 = vst [vmem:[%s3555_s15 + $0x358] sm:$0xff] %v2513_v1  ;;  %2918 = vmatmul.msk.f32.gmra.mxu3 %vm1620_vm2, %v1597_v55 }
 0x661   : > { %v2346_v4 = vpop.f32.mrf.mxu3 }
 0x662   : > { %v2347_v6 = vadd.f32 %v3843_v61, %v2346_v4 }
 0x664   : > { %v2514_v10 = vmax.f32 %v2347_v6, 0.0 }
 0x666   : > { %2642 = vst [vmem:[%s3555_s15 + $0x360] sm:$0xff] %v2514_v10  ;;  %2919 = vmatmul.msk.f32.gmra.mxu3 %vm1620_vm2, %v1600_v8 }
 0x669   : > { %v2349_v48 = vpop.f32.mrf.mxu3 }
 0x66a   : > { %v2350_v15 = vadd.f32 %v3843_v61, %v2349_v48 }
 0x66c   : > { %v2515_v42 = vmax.f32 %v2350_v15, 0.0 }
 0x66e   : > { %2643 = vst [vmem:[%s3555_s15 + $0x368] sm:$0xff] %v2515_v42  ;;  %2920 = vmatmul.msk.f32.gmra.mxu3 %vm1620_vm2, %v1603_v16 }
 0x671   : > { %v2352_v18 = vpop.f32.mrf.mxu3 }
 0x672   : > { %v2353_v20 = vadd.f32 %v3843_v61, %v2352_v18 }
 0x674   : > { %v2516_v54 = vmax.f32 %v2353_v20, 0.0 }
 0x676   : > { %2644 = vst [vmem:[%s3555_s15 + $0x370] sm:$0xff] %v2516_v54  ;;  %2921 = vmatmul.msk.f32.gmra.mxu3 %vm1620_vm2, %v1606_v60 }
 0x679   : > { %v2355_v3 = vpop.f32.mrf.mxu3 }
 0x67a   : > { %v2356_v44 = vadd.f32 %v3843_v61, %v2355_v3 }
 0x67c   : > { %v2517_v9 = vmax.f32 %v2356_v44, 0.0 }
 0x67e   : > { %2645 = vst [vmem:[%s3555_s15 + $0x378] sm:$0xff] %v2517_v9 }
 0x681   : > { %v2358_v23 = vpop.f32.mrf.mxu3 }
 0x682   : > { %v2359_v12 = vadd.f32 %v3843_v61, %v2358_v23 }
 0x684   : > { %v2518_v46 = vmax.f32 %v2359_v12, 0.0 }
 0x686   : > { %2646 = vst [vmem:[%s3555_s15 + $0x380] sm:$0xff] %v2518_v46 }
 0x689   : > { %v2361_v47 = vpop.f32.mrf.mxu3 }
 0x68a   : > { %v2362_v62 = vadd.f32 %v3843_v61, %v2361_v47 }
 0x68c   : > { %v2519_v38 = vmax.f32 %v2362_v62, 0.0 }
 0x68e   : > { %2647 = vst [vmem:[%s3555_s15 + $0x388] sm:$0xff] %v2519_v38 }
 0x691   : > { %v2364_v2 = vpop.f32.mrf.mxu3 }
 0x692   : > { %v2365_v11 = vadd.f32 %v3843_v61, %v2364_v2 }
 0x694   : > { %v2520_v49 = vmax.f32 %v2365_v11, 0.0 }
 0x696   : > { %2648 = vst [vmem:[%s3555_s15 + $0x390] sm:$0xff] %v2520_v49 }
 0x699   : > { %v2367_v19 = vpop.f32.mrf.mxu3 }
 0x69a   : > { %v2368_v5 = vadd.f32 %v3843_v61, %v2367_v19 }
 0x69c   : > { %v2521_v25 = vmax.f32 %v2368_v5, 0.0 }
 0x69e   : > { %2649 = vst [vmem:[%s3555_s15 + $0x398] sm:$0xff] %v2521_v25 }
 0x6a1   : > { %v2370_v14 = vpop.f32.mrf.mxu3 }
 0x6a2   : > { %v2371_v58 = vadd.f32 %v3843_v61, %v2370_v14 }
 0x6a4   : > { %v2522_v0 = vmax.f32 %v2371_v58, 0.0 }
 0x6a6   : > { %2650 = vst [vmem:[%s3555_s15 + $0x3a0] sm:$0xff] %v2522_v0 }
 0x6a9   : > { %v2373_v40 = vpop.f32.mrf.mxu3 }
 0x6aa   : > { %v2374_v17 = vadd.f32 %v3843_v61, %v2373_v40 }
 0x6ac   : > { %v2523_v26 = vmax.f32 %v2374_v17, 0.0 }
 0x6ae   : > { %2651 = vst [vmem:[%s3555_s15 + $0x3a8] sm:$0xff] %v2523_v26 }
 0x6b1   : > { %v2376_v22 = vpop.f32.mrf.mxu3 }
 0x6b2   : > { %v2377_v29 = vadd.f32 %v3843_v61, %v2376_v22 }
 0x6b4   : > { %v2524_v28 = vmax.f32 %v2377_v29, 0.0 }
 0x6b6   : > { %2652 = vst [vmem:[%s3555_s15 + $0x3b0] sm:$0xff] %v2524_v28 }
 0x6b9   : > { %v2379_v51 = vpop.f32.mrf.mxu3 }
 0x6ba   : > { %v2380_v31 = vadd.f32 %v3843_v61, %v2379_v51 }
 0x6bc   : > { %v2525_v27 = vmax.f32 %v2380_v31, 0.0 }
 0x6be   : > { %2653 = vst [vmem:[%s3555_s15 + $0x3b8] sm:$0xff] %v2525_v27 }
 0x6c1   : > { %v2382_v33 = vpop.f32.mrf.mxu3 }
 0x6c2   : > { %v2383_v30 = vadd.f32 %v3843_v61, %v2382_v33 }
 0x6c4   : > { %v2526_v37 = vmax.f32 %v2383_v30, 0.0 }
 0x6c6   : > { %2654 = vst [vmem:[%s3555_s15 + $0x3c0] sm:$0xff] %v2526_v37 }
 0x6c9   : > { %v2385_v39 = vpop.f32.mrf.mxu3 }
 0x6ca   : > { %v2386_v32 = vadd.f32 %v3843_v61, %v2385_v39 }
 0x6cc   : > { %v2527_v43 = vmax.f32 %v2386_v32, 0.0 }
 0x6ce   : > { %2655 = vst [vmem:[%s3555_s15 + $0x3c8] sm:$0xff] %v2527_v43 }
 0x6d1   : > { %v2388_v45 = vpop.f32.mrf.mxu3 }
 0x6d2   : > { %v2389_v53 = vadd.f32 %v3843_v61, %v2388_v45 }
 0x6d4   : > { %v2528_v35 = vmax.f32 %v2389_v53, 0.0 }
 0x6d6   : > { %2656 = vst [vmem:[%s3555_s15 + $0x3d0] sm:$0xff] %v2528_v35 }
 0x6d9   : > { %v2391_v34 = vpop.f32.mrf.mxu3 }
 0x6da   : > { %v2392_v50 = vadd.f32 %v3843_v61, %v2391_v34 }
 0x6dc   : > { %v2529_v52 = vmax.f32 %v2392_v50, 0.0 }
 0x6de   : > { %2657 = vst [vmem:[%s3555_s15 + $0x3d8] sm:$0xff] %v2529_v52 }
 0x6e1   : > { %v2394_v36 = vpop.f32.mrf.mxu3 }
 0x6e2   : > { %v2395_v56 = vadd.f32 %v3843_v61, %v2394_v36 }
 0x6e4   : > { %v2530_v59 = vmax.f32 %v2395_v56, 0.0 }
 0x6e6   : > { %2658 = vst [vmem:[%s3555_s15 + $0x3e0] sm:$0xff] %v2530_v59 }
 0x6e9   : > { %v2397_v24 = vpop.f32.mrf.mxu3 }
 0x6ea   : > { %v2398_v55 = vadd.f32 %v3843_v61, %v2397_v24 }
 0x6ec   : > { %v2531_v41 = vmax.f32 %v2398_v55, 0.0 }
 0x6ee   : > { %2659 = vst [vmem:[%s3555_s15 + $0x3e8] sm:$0xff] %v2531_v41 }
 0x6f1   : > { %v2400_v63 = vpop.f32.mrf.mxu3 }
 0x6f2   : > { %v2401_v1 = vadd.f32 %v3843_v61, %v2400_v63 }
 0x6f4   : > { %v2532_v4 = vmax.f32 %v2401_v1, 0.0 }
 0x6f6   : > { %2660 = vst [vmem:[%s3555_s15 + $0x3f0] sm:$0xff] %v2532_v4 }
 0x6f9   : > { %v2403_v6 = vpop.f32.mrf.mxu3 }
 0x6fa   : > { %v2404_v8 = vadd.f32 %v3843_v61, %v2403_v6 }
 0x6fc   : > { %v2533_v10 = vmax.f32 %v2404_v8, 0.0 }
 0x6fe   : > { %2661 = vst [vmem:[%s3555_s15 + $0x3f8] sm:$0xff] %v2533_v10 }
 0x6ff   : > { %3084 = shalt.err (!%p3081_p8)
}
 0x700   : > { %s3128_s11 = smov 128   ;;  %s3129_s15 = smov 8  }
 0x701   : > { %2973 = dma.vmem_to_hbm [thread:$0]  (%p3203_p5), %s2676_s9, 16384, %s2678_s10, %s2663_s12, %s3128_s11, %s3128_s11, %s3129_s15  }
 0x702 PF: > { %p2985_p9 = scmp.ge.s32.totalorder %s3123_s24, 2  ;;  %s2692_s20 = sand.u32 1, %s3111_s21  }
 0x703   : > { %s2693_s26 = scalar_lea.sflag [#allocation4], %s2692_s20 }
 0x704   : > { %p2980_p10 = pnand %p2985_p9, %p3207_p6 }
 0x706   : > { %p2981_p11 = pneg %p2980_p10 }
 0x708   : > { %3106 = dma.done.wait (%p2981_p11), %s2693_s26, 16384  }
 0x709   : > { %3108 = vsyncadd (%p2981_p11), %s2693_s26, 4294950912  ;;  %p17_p12 = scmp.ge.s32.totalorder %s3190_s27, 4   ;;  %s3985_s21 = smov %s3115_s22 }
 0x70a   : > { %s3986_s22 = smov %s3119_s23  ;;  %s3987_s23 = smov %s3201_s30 }
 0x70b   : > { %s3988_s24 = smov %s3190_s27  ;;  %19 = sbr.rel (!%p17_p12) target bundleno = 4 (0x4), region = 84 }
 0x710   :  { %2699 = vsyncpa [#allocation3], 1 }
 0x711   :  { %2701 = vsyncpa [#allocation3 + $0x1], 1 }
 0x712   :  { %2702 = vsyncpa [#allocation4], 1 }
 0x713   :  { %2704 = vsyncpa [#allocation4 + $0x1], 1 }

</bundles_post_ra>
